<compile_context>
chip_gen: v7x
topology: tpu7x:2x2x1
jax: 0.10.0
libtpu: 0.0.40
codegen_flags: <defaults>
</compile_context>

<pallas_src>
import functools

import jax
import jax.numpy as jnp
from jax.experimental import pallas as pl
from jax.experimental.pallas import tpu as pltpu

EMBED_DIM = 64
NUM_HEADS = 4
HEAD_DIM = EMBED_DIM // NUM_HEADS
HIDDEN_DIM = 4 * EMBED_DIM
LN_EPS = 1e-5
INV_SQRT2 = 0.7071067811865476


def _recip(x):
    # EUP approximate reciprocal + one Newton-Raphson refinement (~f32 accurate).
    # Keeps the divide off the VALU slots.
    r = pl.reciprocal(x, approx=True)
    return r * (2.0 - x * r)


def _erf(x):
    # Abramowitz & Stegun 7.1.26 rational approximation (max abs err ~1.5e-7).
    # Used because erf has no direct Mosaic lowering; matches PyTorch's exact GELU to f32.
    a1, a2, a3, a4, a5 = 0.254829592, -0.284496736, 1.421413741, -1.453152027, 1.061405429
    p = 0.3275911
    ax = jnp.abs(x)
    t = _recip(1.0 + p * ax)
    poly = ((((a5 * t + a4) * t + a3) * t + a2) * t + a1) * t
    r = 1.0 - poly * jnp.exp(-ax * ax)
    return jnp.where(x >= 0, r, -r)


def _gelu_exact(x):
    # PyTorch nn.GELU() default (approximate='none'): 0.5*x*(1+erf(x/sqrt(2)))
    return 0.5 * x * (1.0 + _erf(x * INV_SQRT2))


def _layernorm(x, g, b):
    inv_n = 1.0 / x.shape[-1]
    mean = jnp.sum(x, axis=-1, keepdims=True) * inv_n
    d = x - mean
    var = jnp.sum(d * d, axis=-1, keepdims=True) * inv_n
    return d * jax.lax.rsqrt(var + LN_EPS) * g + b


def encoder_block_kernel(x_ref, ln1_g, ln1_b, w_qkv, b_qkv, w_o, b_o,
                         ln2_g, ln2_b, w1, b1, w2, b2, o_ref, *, tb, seq):
    M = tb * seq
    x = x_ref[...].astype(jnp.float32)                      # (M, E) = (tb*seq, E)

    # ---- LN1 + fused QKV projection over all tb*seq rows at once ----
    xn = _layernorm(x, ln1_g[...], ln1_b[...])
    qkv = jnp.dot(xn, w_qkv[...], preferred_element_type=jnp.float32) + b_qkv[...]   # (M, 3E)

    # ---- multi-head self-attention, batched over tb via 3-D einsums (no concat) ----
    scale = 1.0 / (HEAD_DIM ** 0.5)
    attn = jnp.zeros((M, EMBED_DIM), jnp.float32)
    for h in range(NUM_HEADS):
        q = qkv[:, h * HEAD_DIM:(h + 1) * HEAD_DIM].reshape(tb, seq, HEAD_DIM)
        k = qkv[:, EMBED_DIM + h * HEAD_DIM:
                EMBED_DIM + (h + 1) * HEAD_DIM].reshape(tb, seq, HEAD_DIM)
        v = qkv[:, 2 * EMBED_DIM + h * HEAD_DIM:
                2 * EMBED_DIM + (h + 1) * HEAD_DIM].reshape(tb, seq, HEAD_DIM)

        s = jnp.einsum('bqd,bkd->bqk', q, k,
                       preferred_element_type=jnp.float32) * scale                   # (tb,S,S)
        s = s - jnp.max(s, axis=-1, keepdims=True)
        p = jnp.exp(s)
        p = p * _recip(jnp.sum(p, axis=-1, keepdims=True))
        o_h = jnp.einsum('bqk,bkd->bqd', p, v,
                         preferred_element_type=jnp.float32)                          # (tb,S,D)

        # accumulate the output projection per head -> no head concat / relayout
        attn = attn + jnp.dot(o_h.reshape(M, HEAD_DIM),
                              w_o[h * HEAD_DIM:(h + 1) * HEAD_DIM, :],
                              preferred_element_type=jnp.float32)                     # (M, E)

    x1 = attn + b_o[...] + x

    # ---- LN2 + MLP (Linear -> exact GELU -> Linear) + residual ----
    x2 = _layernorm(x1, ln2_g[...], ln2_b[...])
    hid = jnp.dot(x2, w1[...], preferred_element_type=jnp.float32) + b1[...]          # (M, 4E)
    hid = _gelu_exact(hid)
    y = jnp.dot(hid, w2[...], preferred_element_type=jnp.float32) + b2[...]           # (M, E)

    o_ref[...] = (y + x1).astype(o_ref.dtype)


def _rows_per_step(batch, seq):
    # Smallest divisor of batch giving >= 256 fused rows (fills MXU on v6e/v7x; >=128
    # already suffices on v5e); fall back to the whole batch for tiny inputs.
    divisors = [d for d in range(1, batch + 1) if batch % d == 0]
    for d in divisors:
        if d * seq >= 256:
            return d
    return batch


@jax.jit
def encoder_block(x, params):
    B, S, E = x.shape
    assert E == EMBED_DIM
    (ln1_g, ln1_b, w_qkv, b_qkv, w_o, b_o, ln2_g, ln2_b, w1, b1, w2, b2) = params

    tb = _rows_per_step(B, S)
    if (tb * S) % 8 != 0:        # keep sublane-tileable row blocks
        tb = B
    M = tb * S

    xf = x.reshape(B * S, E)     # lane/sublane-dense (rows, E) slab

    def full(shape):
        return pl.BlockSpec(shape, lambda i: (0, 0))

    in_specs = [
        pl.BlockSpec((M, E), lambda i: (i, 0)),            # tb*S rows per grid step
        full((1, E)), full((1, E)),                        # ln1 gamma / beta
        full((E, 3 * E)), full((1, 3 * E)),                # fused in_proj weight^T / bias
        full((E, E)), full((1, E)),                        # out_proj weight^T / bias
        full((1, E)), full((1, E)),                        # ln2 gamma / beta
        full((E, HIDDEN_DIM)), full((1, HIDDEN_DIM)),      # mlp W1^T / b1
        full((HIDDEN_DIM, E)), full((1, E)),               # mlp W2^T / b2
    ]
    out_spec = pl.BlockSpec((M, E), lambda i: (i, 0))

    kernel = functools.partial(encoder_block_kernel, tb=tb, seq=S)
    out = pl.pallas_call(
        kernel,
        out_shape=jax.ShapeDtypeStruct((B * S, E), x.dtype),
        grid=(B // tb,),
        in_specs=in_specs,
        out_specs=out_spec,
        compiler_params=pltpu.CompilerParams(dimension_semantics=("parallel",)),
    )(xf, ln1_g, ln1_b, w_qkv, b_qkv, w_o, b_o, ln2_g, ln2_b, w1, b1, w2, b2)
    return out.reshape(B, S, E)


def encoder_block_ref(x, params):
    """Pure-JAX reference mirroring PyTorch EncoderBlock.forward."""
    ln1_g, ln1_b, w_qkv, b_qkv, w_o, b_o, ln2_g, ln2_b, w1, b1, w2, b2 = params

    def ln(z, g, b):
        m = jnp.mean(z, -1, keepdims=True)
        v = jnp.mean((z - m) ** 2, -1, keepdims=True)
        return (z - m) / jnp.sqrt(v + LN_EPS) * g + b

    B, S, E = x.shape
    xn = ln(x, ln1_g, ln1_b)
    qkv = xn @ w_qkv + b_qkv
    q, k, v = jnp.split(qkv, 3, axis=-1)

    def split_heads(t):
        return t.reshape(B, S, NUM_HEADS, HEAD_DIM).transpose(0, 2, 1, 3)

    qh, kh, vh = map(split_heads, (q, k, v))
    s = jnp.einsum('bhqd,bhkd->bhqk', qh, kh) / (HEAD_DIM ** 0.5)
    p = jax.nn.softmax(s, axis=-1)
    o = jnp.einsum('bhqk,bhkd->bhqd', p, vh).transpose(0, 2, 1, 3).reshape(B, S, E)
    attn = o @ w_o + b_o
    x1 = attn + x

    x2 = ln(x1, ln2_g, ln2_b)
    hid = jax.nn.gelu(x2 @ w1 + b1, approximate=False)
    y = hid @ w2 + b2
    return y + x1


def init_params(key):
    ks = jax.random.split(key, 6)
    E, H = EMBED_DIM, HIDDEN_DIM
    wscale = 1.0 / (E ** 0.5)
    return (
        jnp.ones((1, E), jnp.float32),                                   # ln1 gamma
        jnp.zeros((1, E), jnp.float32),                                  # ln1 beta
        wscale * jax.random.normal(ks[0], (E, 3 * E), jnp.float32),      # in_proj weight^T
        0.01 * jax.random.normal(ks[1], (1, 3 * E), jnp.float32),        # in_proj bias
        wscale * jax.random.normal(ks[2], (E, E), jnp.float32),          # out_proj weight^T
        jnp.zeros((1, E), jnp.float32),                                  # out_proj bias
        jnp.ones((1, E), jnp.float32),                                   # ln2 gamma
        jnp.zeros((1, E), jnp.float32),                                  # ln2 beta
        wscale * jax.random.normal(ks[3], (E, H), jnp.float32),          # mlp W1^T
        0.01 * jax.random.normal(ks[4], (1, H), jnp.float32),            # mlp b1
        (1.0 / (H ** 0.5)) * jax.random.normal(ks[5], (H, E), jnp.float32),  # mlp W2^T
        jnp.zeros((1, E), jnp.float32),                                  # mlp b2
    )


if __name__ == "__main__":
    B, S, E = 2, 8, EMBED_DIM
    key = jax.random.PRNGKey(0)
    kx, kp = jax.random.split(key)
    x = jax.random.normal(kx, (B, S, E), jnp.float32)
    params = init_params(kp)

    out = encoder_block(x, params)
    jax.block_until_ready(out)

    ref = encoder_block_ref(x, params)
    err = float(jnp.max(jnp.abs(out - ref)))
    # Newton-refined EUP reciprocals keep error ~1e-5; 2e-4 gives safety margin.
    assert jnp.allclose(out, ref, atol=2e-4, rtol=2e-4), f"max abs err {err}"

    print("KERNEL_OK")
</pallas_src>

<mosaic_0001>
module attributes {stable_mosaic.version = 11 : i64} {
  func.func @encoder_block_kernel(%arg0: i32, %arg1: memref<16x64xf32, #tpu.memory_space<vmem>>, %arg2: memref<1x64xf32, #tpu.memory_space<vmem>>, %arg3: memref<1x64xf32, #tpu.memory_space<vmem>>, %arg4: memref<64x192xf32, #tpu.memory_space<vmem>>, %arg5: memref<1x192xf32, #tpu.memory_space<vmem>>, %arg6: memref<64x64xf32, #tpu.memory_space<vmem>>, %arg7: memref<1x64xf32, #tpu.memory_space<vmem>>, %arg8: memref<1x64xf32, #tpu.memory_space<vmem>>, %arg9: memref<1x64xf32, #tpu.memory_space<vmem>>, %arg10: memref<64x256xf32, #tpu.memory_space<vmem>>, %arg11: memref<1x256xf32, #tpu.memory_space<vmem>>, %arg12: memref<256x64xf32, #tpu.memory_space<vmem>>, %arg13: memref<1x64xf32, #tpu.memory_space<vmem>>, %arg14: memref<16x64xf32, #tpu.memory_space<vmem>>) attributes {dimension_semantics = [#tpu.dimension_semantics<parallel>], iteration_bounds = array<i64: 1>, scalar_prefetch = 0 : i64, scratch_operands = 0 : i64, tpu.core_type = #tpu.core_type<tc>, window_params = [{transform_indices = @transform_0, window_bounds = array<i64: 16, 64>}, {pipeline_mode = #tpu.pipeline_mode<synchronous>, transform_indices = @transform_1, window_bounds = array<i64: 1, 64>}, {pipeline_mode = #tpu.pipeline_mode<synchronous>, transform_indices = @transform_2, window_bounds = array<i64: 1, 64>}, {pipeline_mode = #tpu.pipeline_mode<synchronous>, transform_indices = @transform_3, window_bounds = array<i64: 64, 192>}, {pipeline_mode = #tpu.pipeline_mode<synchronous>, transform_indices = @transform_4, window_bounds = array<i64: 1, 192>}, {pipeline_mode = #tpu.pipeline_mode<synchronous>, transform_indices = @transform_5, window_bounds = array<i64: 64, 64>}, {pipeline_mode = #tpu.pipeline_mode<synchronous>, transform_indices = @transform_6, window_bounds = array<i64: 1, 64>}, {pipeline_mode = #tpu.pipeline_mode<synchronous>, transform_indices = @transform_7, window_bounds = array<i64: 1, 64>}, {pipeline_mode = #tpu.pipeline_mode<synchronous>, transform_indices = @transform_8, window_bounds = array<i64: 1, 64>}, {pipeline_mode = #tpu.pipeline_mode<synchronous>, transform_indices = @transform_9, window_bounds = array<i64: 64, 256>}, {pipeline_mode = #tpu.pipeline_mode<synchronous>, transform_indices = @transform_10, window_bounds = array<i64: 1, 256>}, {pipeline_mode = #tpu.pipeline_mode<synchronous>, transform_indices = @transform_11, window_bounds = array<i64: 256, 64>}, {pipeline_mode = #tpu.pipeline_mode<synchronous>, transform_indices = @transform_12, window_bounds = array<i64: 1, 64>}, {transform_indices = @transform_13, window_bounds = array<i64: 16, 64>}]} {
    %c0 = arith.constant 0 : index
    %c0_0 = arith.constant 0 : index
    %0 = vector.load %arg1[%c0, %c0_0] : memref<16x64xf32, #tpu.memory_space<vmem>>, vector<16x64xf32>
    %c0_1 = arith.constant 0 : index
    %c0_2 = arith.constant 0 : index
    %1 = vector.load %arg2[%c0_1, %c0_2] : memref<1x64xf32, #tpu.memory_space<vmem>>, vector<1x64xf32>
    %c0_3 = arith.constant 0 : index
    %c0_4 = arith.constant 0 : index
    %2 = vector.load %arg3[%c0_3, %c0_4] : memref<1x64xf32, #tpu.memory_space<vmem>>, vector<1x64xf32>
    %cst = arith.constant dense<0.000000e+00> : vector<16xf32>
    %3 = vector.multi_reduction <add>, %0, %cst [1] : vector<16x64xf32> to vector<16xf32>
    %4 = vector.shape_cast %3 : vector<16xf32> to vector<16x1xf32>
    %cst_5 = arith.constant 1.562500e-02 : f32
    %5 = vector.broadcast %cst_5 : f32 to vector<16x1xf32>
    %6 = arith.mulf %4, %5 : vector<16x1xf32>
    %7 = vector.broadcast %6 : vector<16x1xf32> to vector<16x64xf32>
    %8 = arith.subf %0, %7 : vector<16x64xf32>
    %9 = arith.mulf %8, %8 : vector<16x64xf32>
    %cst_6 = arith.constant dense<0.000000e+00> : vector<16xf32>
    %10 = vector.multi_reduction <add>, %9, %cst_6 [1] : vector<16x64xf32> to vector<16xf32>
    %11 = vector.shape_cast %10 : vector<16xf32> to vector<16x1xf32>
    %cst_7 = arith.constant 1.562500e-02 : f32
    %12 = vector.broadcast %cst_7 : f32 to vector<16x1xf32>
    %13 = arith.mulf %11, %12 : vector<16x1xf32>
    %cst_8 = arith.constant 9.99999974E-6 : f32
    %14 = vector.broadcast %cst_8 : f32 to vector<16x1xf32>
    %15 = arith.addf %13, %14 : vector<16x1xf32>
    %16 = math.rsqrt %15 : vector<16x1xf32>
    %17 = vector.broadcast %16 : vector<16x1xf32> to vector<16x64xf32>
    %18 = arith.mulf %8, %17 : vector<16x64xf32>
    %19 = vector.broadcast %1 : vector<1x64xf32> to vector<16x64xf32>
    %20 = arith.mulf %18, %19 : vector<16x64xf32>
    %21 = vector.broadcast %2 : vector<1x64xf32> to vector<16x64xf32>
    %22 = arith.addf %20, %21 : vector<16x64xf32>
    %c0_9 = arith.constant 0 : index
    %c0_10 = arith.constant 0 : index
    %23 = vector.load %arg4[%c0_9, %c0_10] : memref<64x192xf32, #tpu.memory_space<vmem>>, vector<64x192xf32>
    %cst_11 = arith.constant dense<0.000000e+00> : vector<16x192xf32>
    %24 = tpu.matmul %22, %23, %cst_11 {dimension_numbers = #tpu.dot_dimension_numbers<[1], [0], [0], [1], [0, 0, 1, 1], [], []>} : vector<16x64xf32>, vector<64x192xf32>, vector<16x192xf32> -> vector<16x192xf32>
    %c0_12 = arith.constant 0 : index
    %c0_13 = arith.constant 0 : index
    %25 = vector.load %arg5[%c0_12, %c0_13] : memref<1x192xf32, #tpu.memory_space<vmem>>, vector<1x192xf32>
    %26 = vector.broadcast %25 : vector<1x192xf32> to vector<16x192xf32>
    %27 = arith.addf %24, %26 : vector<16x192xf32>
    %cst_14 = arith.constant 0.000000e+00 : f32
    %28 = vector.broadcast %cst_14 : f32 to vector<16x64xf32>
    %29 = vector.extract_strided_slice %27 {offsets = [0, 0], sizes = [16, 16], strides = [1, 1]} : vector<16x192xf32> to vector<16x16xf32>
    %30 = vector.shape_cast %29 : vector<16x16xf32> to vector<2x8x16xf32>
    %31 = vector.extract_strided_slice %27 {offsets = [0, 64], sizes = [16, 16], strides = [1, 1]} : vector<16x192xf32> to vector<16x16xf32>
    %32 = vector.shape_cast %31 : vector<16x16xf32> to vector<2x8x16xf32>
    %33 = vector.extract_strided_slice %27 {offsets = [0, 128], sizes = [16, 16], strides = [1, 1]} : vector<16x192xf32> to vector<16x16xf32>
    %34 = vector.shape_cast %33 : vector<16x16xf32> to vector<2x8x16xf32>
    "tpu.trace_start"() <{level = 10 : i32, message = "bqd,bkd->bqk"}> : () -> ()
    %cst_15 = arith.constant dense<0.000000e+00> : vector<2x8x8xf32>
    %35 = tpu.matmul %30, %32, %cst_15 {dimension_numbers = #tpu.dot_dimension_numbers<[2], [2], [1], [1], [0, 0, 0, 1, 1, 1], [0], [0]>} : vector<2x8x16xf32>, vector<2x8x16xf32>, vector<2x8x8xf32> -> vector<2x8x8xf32>
    "tpu.trace_stop"() : () -> ()
    %cst_16 = arith.constant 2.500000e-01 : f32
    %36 = vector.broadcast %cst_16 : f32 to vector<2x8x8xf32>
    %37 = arith.mulf %35, %36 : vector<2x8x8xf32>
    %cst_17 = arith.constant dense<0xFF800000> : vector<2x8xf32>
    %38 = vector.multi_reduction <maximumf>, %37, %cst_17 [2] : vector<2x8x8xf32> to vector<2x8xf32>
    %39 = vector.shape_cast %38 : vector<2x8xf32> to vector<2x8x1xf32>
    %40 = vector.broadcast %39 : vector<2x8x1xf32> to vector<2x8x8xf32>
    %41 = arith.subf %37, %40 : vector<2x8x8xf32>
    %42 = math.exp %41 : vector<2x8x8xf32>
    %cst_18 = arith.constant dense<0.000000e+00> : vector<2x8xf32>
    %43 = vector.multi_reduction <add>, %42, %cst_18 [2] : vector<2x8x8xf32> to vector<2x8xf32>
    %44 = vector.shape_cast %43 : vector<2x8xf32> to vector<2x8x1xf32>
    %45 = tpu.reciprocal %44 {approx = true} : vector<2x8x1xf32> -> vector<2x8x1xf32>
    %46 = arith.mulf %44, %45 : vector<2x8x1xf32>
    %cst_19 = arith.constant 2.000000e+00 : f32
    %47 = vector.broadcast %cst_19 : f32 to vector<2x8x1xf32>
    %48 = arith.subf %47, %46 : vector<2x8x1xf32>
    %49 = arith.mulf %45, %48 : vector<2x8x1xf32>
    %50 = vector.broadcast %49 : vector<2x8x1xf32> to vector<2x8x8xf32>
    %51 = arith.mulf %42, %50 : vector<2x8x8xf32>
    "tpu.trace_start"() <{level = 10 : i32, message = "bqk,bkd->bqd"}> : () -> ()
    %cst_20 = arith.constant dense<0.000000e+00> : vector<2x8x16xf32>
    %52 = tpu.matmul %51, %34, %cst_20 {dimension_numbers = #tpu.dot_dimension_numbers<[2], [1], [1], [2], [0, 0, 0, 1, 1, 2], [0], [0]>} : vector<2x8x8xf32>, vector<2x8x16xf32>, vector<2x8x16xf32> -> vector<2x8x16xf32>
    "tpu.trace_stop"() : () -> ()
    %53 = vector.shape_cast %52 : vector<2x8x16xf32> to vector<16x16xf32>
    %c0_21 = arith.constant 0 : index
    %c0_22 = arith.constant 0 : index
    %54 = vector.load %arg6[%c0_21, %c0_22] : memref<64x64xf32, #tpu.memory_space<vmem>>, vector<16x64xf32>
    %cst_23 = arith.constant dense<0.000000e+00> : vector<16x64xf32>
    %55 = tpu.matmul %53, %54, %cst_23 {dimension_numbers = #tpu.dot_dimension_numbers<[1], [0], [0], [1], [0, 0, 1, 1], [], []>} : vector<16x16xf32>, vector<16x64xf32>, vector<16x64xf32> -> vector<16x64xf32>
    %56 = arith.addf %28, %55 : vector<16x64xf32>
    %57 = vector.extract_strided_slice %27 {offsets = [0, 16], sizes = [16, 16], strides = [1, 1]} : vector<16x192xf32> to vector<16x16xf32>
    %58 = vector.shape_cast %57 : vector<16x16xf32> to vector<2x8x16xf32>
    %59 = vector.extract_strided_slice %27 {offsets = [0, 80], sizes = [16, 16], strides = [1, 1]} : vector<16x192xf32> to vector<16x16xf32>
    %60 = vector.shape_cast %59 : vector<16x16xf32> to vector<2x8x16xf32>
    %61 = vector.extract_strided_slice %27 {offsets = [0, 144], sizes = [16, 16], strides = [1, 1]} : vector<16x192xf32> to vector<16x16xf32>
    %62 = vector.shape_cast %61 : vector<16x16xf32> to vector<2x8x16xf32>
    "tpu.trace_start"() <{level = 10 : i32, message = "bqd,bkd->bqk"}> : () -> ()
    %cst_24 = arith.constant dense<0.000000e+00> : vector<2x8x8xf32>
    %63 = tpu.matmul %58, %60, %cst_24 {dimension_numbers = #tpu.dot_dimension_numbers<[2], [2], [1], [1], [0, 0, 0, 1, 1, 1], [0], [0]>} : vector<2x8x16xf32>, vector<2x8x16xf32>, vector<2x8x8xf32> -> vector<2x8x8xf32>
    "tpu.trace_stop"() : () -> ()
    %cst_25 = arith.constant 2.500000e-01 : f32
    %64 = vector.broadcast %cst_25 : f32 to vector<2x8x8xf32>
    %65 = arith.mulf %63, %64 : vector<2x8x8xf32>
    %cst_26 = arith.constant dense<0xFF800000> : vector<2x8xf32>
    %66 = vector.multi_reduction <maximumf>, %65, %cst_26 [2] : vector<2x8x8xf32> to vector<2x8xf32>
    %67 = vector.shape_cast %66 : vector<2x8xf32> to vector<2x8x1xf32>
    %68 = vector.broadcast %67 : vector<2x8x1xf32> to vector<2x8x8xf32>
    %69 = arith.subf %65, %68 : vector<2x8x8xf32>
    %70 = math.exp %69 : vector<2x8x8xf32>
    %cst_27 = arith.constant dense<0.000000e+00> : vector<2x8xf32>
    %71 = vector.multi_reduction <add>, %70, %cst_27 [2] : vector<2x8x8xf32> to vector<2x8xf32>
    %72 = vector.shape_cast %71 : vector<2x8xf32> to vector<2x8x1xf32>
    %73 = tpu.reciprocal %72 {approx = true} : vector<2x8x1xf32> -> vector<2x8x1xf32>
    %74 = arith.mulf %72, %73 : vector<2x8x1xf32>
    %cst_28 = arith.constant 2.000000e+00 : f32
    %75 = vector.broadcast %cst_28 : f32 to vector<2x8x1xf32>
    %76 = arith.subf %75, %74 : vector<2x8x1xf32>
    %77 = arith.mulf %73, %76 : vector<2x8x1xf32>
    %78 = vector.broadcast %77 : vector<2x8x1xf32> to vector<2x8x8xf32>
    %79 = arith.mulf %70, %78 : vector<2x8x8xf32>
    "tpu.trace_start"() <{level = 10 : i32, message = "bqk,bkd->bqd"}> : () -> ()
    %cst_29 = arith.constant dense<0.000000e+00> : vector<2x8x16xf32>
    %80 = tpu.matmul %79, %62, %cst_29 {dimension_numbers = #tpu.dot_dimension_numbers<[2], [1], [1], [2], [0, 0, 0, 1, 1, 2], [0], [0]>} : vector<2x8x8xf32>, vector<2x8x16xf32>, vector<2x8x16xf32> -> vector<2x8x16xf32>
    "tpu.trace_stop"() : () -> ()
    %81 = vector.shape_cast %80 : vector<2x8x16xf32> to vector<16x16xf32>
    %c16 = arith.constant 16 : index
    %c0_30 = arith.constant 0 : index
    %82 = vector.load %arg6[%c16, %c0_30] : memref<64x64xf32, #tpu.memory_space<vmem>>, vector<16x64xf32>
    %cst_31 = arith.constant dense<0.000000e+00> : vector<16x64xf32>
    %83 = tpu.matmul %81, %82, %cst_31 {dimension_numbers = #tpu.dot_dimension_numbers<[1], [0], [0], [1], [0, 0, 1, 1], [], []>} : vector<16x16xf32>, vector<16x64xf32>, vector<16x64xf32> -> vector<16x64xf32>
    %84 = arith.addf %56, %83 : vector<16x64xf32>
    %85 = vector.extract_strided_slice %27 {offsets = [0, 32], sizes = [16, 16], strides = [1, 1]} : vector<16x192xf32> to vector<16x16xf32>
    %86 = vector.shape_cast %85 : vector<16x16xf32> to vector<2x8x16xf32>
    %87 = vector.extract_strided_slice %27 {offsets = [0, 96], sizes = [16, 16], strides = [1, 1]} : vector<16x192xf32> to vector<16x16xf32>
    %88 = vector.shape_cast %87 : vector<16x16xf32> to vector<2x8x16xf32>
    %89 = vector.extract_strided_slice %27 {offsets = [0, 160], sizes = [16, 16], strides = [1, 1]} : vector<16x192xf32> to vector<16x16xf32>
    %90 = vector.shape_cast %89 : vector<16x16xf32> to vector<2x8x16xf32>
    "tpu.trace_start"() <{level = 10 : i32, message = "bqd,bkd->bqk"}> : () -> ()
    %cst_32 = arith.constant dense<0.000000e+00> : vector<2x8x8xf32>
    %91 = tpu.matmul %86, %88, %cst_32 {dimension_numbers = #tpu.dot_dimension_numbers<[2], [2], [1], [1], [0, 0, 0, 1, 1, 1], [0], [0]>} : vector<2x8x16xf32>, vector<2x8x16xf32>, vector<2x8x8xf32> -> vector<2x8x8xf32>
    "tpu.trace_stop"() : () -> ()
    %cst_33 = arith.constant 2.500000e-01 : f32
    %92 = vector.broadcast %cst_33 : f32 to vector<2x8x8xf32>
    %93 = arith.mulf %91, %92 : vector<2x8x8xf32>
    %cst_34 = arith.constant dense<0xFF800000> : vector<2x8xf32>
    %94 = vector.multi_reduction <maximumf>, %93, %cst_34 [2] : vector<2x8x8xf32> to vector<2x8xf32>
    %95 = vector.shape_cast %94 : vector<2x8xf32> to vector<2x8x1xf32>
    %96 = vector.broadcast %95 : vector<2x8x1xf32> to vector<2x8x8xf32>
    %97 = arith.subf %93, %96 : vector<2x8x8xf32>
    %98 = math.exp %97 : vector<2x8x8xf32>
    %cst_35 = arith.constant dense<0.000000e+00> : vector<2x8xf32>
    %99 = vector.multi_reduction <add>, %98, %cst_35 [2] : vector<2x8x8xf32> to vector<2x8xf32>
    %100 = vector.shape_cast %99 : vector<2x8xf32> to vector<2x8x1xf32>
    %101 = tpu.reciprocal %100 {approx = true} : vector<2x8x1xf32> -> vector<2x8x1xf32>
    %102 = arith.mulf %100, %101 : vector<2x8x1xf32>
    %cst_36 = arith.constant 2.000000e+00 : f32
    %103 = vector.broadcast %cst_36 : f32 to vector<2x8x1xf32>
    %104 = arith.subf %103, %102 : vector<2x8x1xf32>
    %105 = arith.mulf %101, %104 : vector<2x8x1xf32>
    %106 = vector.broadcast %105 : vector<2x8x1xf32> to vector<2x8x8xf32>
    %107 = arith.mulf %98, %106 : vector<2x8x8xf32>
    "tpu.trace_start"() <{level = 10 : i32, message = "bqk,bkd->bqd"}> : () -> ()
    %cst_37 = arith.constant dense<0.000000e+00> : vector<2x8x16xf32>
    %108 = tpu.matmul %107, %90, %cst_37 {dimension_numbers = #tpu.dot_dimension_numbers<[2], [1], [1], [2], [0, 0, 0, 1, 1, 2], [0], [0]>} : vector<2x8x8xf32>, vector<2x8x16xf32>, vector<2x8x16xf32> -> vector<2x8x16xf32>
    "tpu.trace_stop"() : () -> ()
    %109 = vector.shape_cast %108 : vector<2x8x16xf32> to vector<16x16xf32>
    %c32 = arith.constant 32 : index
    %c0_38 = arith.constant 0 : index
    %110 = vector.load %arg6[%c32, %c0_38] : memref<64x64xf32, #tpu.memory_space<vmem>>, vector<16x64xf32>
    %cst_39 = arith.constant dense<0.000000e+00> : vector<16x64xf32>
    %111 = tpu.matmul %109, %110, %cst_39 {dimension_numbers = #tpu.dot_dimension_numbers<[1], [0], [0], [1], [0, 0, 1, 1], [], []>} : vector<16x16xf32>, vector<16x64xf32>, vector<16x64xf32> -> vector<16x64xf32>
    %112 = arith.addf %84, %111 : vector<16x64xf32>
    %113 = vector.extract_strided_slice %27 {offsets = [0, 48], sizes = [16, 16], strides = [1, 1]} : vector<16x192xf32> to vector<16x16xf32>
    %114 = vector.shape_cast %113 : vector<16x16xf32> to vector<2x8x16xf32>
    %115 = vector.extract_strided_slice %27 {offsets = [0, 112], sizes = [16, 16], strides = [1, 1]} : vector<16x192xf32> to vector<16x16xf32>
    %116 = vector.shape_cast %115 : vector<16x16xf32> to vector<2x8x16xf32>
    %117 = vector.extract_strided_slice %27 {offsets = [0, 176], sizes = [16, 16], strides = [1, 1]} : vector<16x192xf32> to vector<16x16xf32>
    %118 = vector.shape_cast %117 : vector<16x16xf32> to vector<2x8x16xf32>
    "tpu.trace_start"() <{level = 10 : i32, message = "bqd,bkd->bqk"}> : () -> ()
    %cst_40 = arith.constant dense<0.000000e+00> : vector<2x8x8xf32>
    %119 = tpu.matmul %114, %116, %cst_40 {dimension_numbers = #tpu.dot_dimension_numbers<[2], [2], [1], [1], [0, 0, 0, 1, 1, 1], [0], [0]>} : vector<2x8x16xf32>, vector<2x8x16xf32>, vector<2x8x8xf32> -> vector<2x8x8xf32>
    "tpu.trace_stop"() : () -> ()
    %cst_41 = arith.constant 2.500000e-01 : f32
    %120 = vector.broadcast %cst_41 : f32 to vector<2x8x8xf32>
    %121 = arith.mulf %119, %120 : vector<2x8x8xf32>
    %cst_42 = arith.constant dense<0xFF800000> : vector<2x8xf32>
    %122 = vector.multi_reduction <maximumf>, %121, %cst_42 [2] : vector<2x8x8xf32> to vector<2x8xf32>
    %123 = vector.shape_cast %122 : vector<2x8xf32> to vector<2x8x1xf32>
    %124 = vector.broadcast %123 : vector<2x8x1xf32> to vector<2x8x8xf32>
    %125 = arith.subf %121, %124 : vector<2x8x8xf32>
    %126 = math.exp %125 : vector<2x8x8xf32>
    %cst_43 = arith.constant dense<0.000000e+00> : vector<2x8xf32>
    %127 = vector.multi_reduction <add>, %126, %cst_43 [2] : vector<2x8x8xf32> to vector<2x8xf32>
    %128 = vector.shape_cast %127 : vector<2x8xf32> to vector<2x8x1xf32>
    %129 = tpu.reciprocal %128 {approx = true} : vector<2x8x1xf32> -> vector<2x8x1xf32>
    %130 = arith.mulf %128, %129 : vector<2x8x1xf32>
    %cst_44 = arith.constant 2.000000e+00 : f32
    %131 = vector.broadcast %cst_44 : f32 to vector<2x8x1xf32>
    %132 = arith.subf %131, %130 : vector<2x8x1xf32>
    %133 = arith.mulf %129, %132 : vector<2x8x1xf32>
    %134 = vector.broadcast %133 : vector<2x8x1xf32> to vector<2x8x8xf32>
    %135 = arith.mulf %126, %134 : vector<2x8x8xf32>
    "tpu.trace_start"() <{level = 10 : i32, message = "bqk,bkd->bqd"}> : () -> ()
    %cst_45 = arith.constant dense<0.000000e+00> : vector<2x8x16xf32>
    %136 = tpu.matmul %135, %118, %cst_45 {dimension_numbers = #tpu.dot_dimension_numbers<[2], [1], [1], [2], [0, 0, 0, 1, 1, 2], [0], [0]>} : vector<2x8x8xf32>, vector<2x8x16xf32>, vector<2x8x16xf32> -> vector<2x8x16xf32>
    "tpu.trace_stop"() : () -> ()
    %137 = vector.shape_cast %136 : vector<2x8x16xf32> to vector<16x16xf32>
    %c48 = arith.constant 48 : index
    %c0_46 = arith.constant 0 : index
    %138 = vector.load %arg6[%c48, %c0_46] : memref<64x64xf32, #tpu.memory_space<vmem>>, vector<16x64xf32>
    %cst_47 = arith.constant dense<0.000000e+00> : vector<16x64xf32>
    %139 = tpu.matmul %137, %138, %cst_47 {dimension_numbers = #tpu.dot_dimension_numbers<[1], [0], [0], [1], [0, 0, 1, 1], [], []>} : vector<16x16xf32>, vector<16x64xf32>, vector<16x64xf32> -> vector<16x64xf32>
    %140 = arith.addf %112, %139 : vector<16x64xf32>
    %c0_48 = arith.constant 0 : index
    %c0_49 = arith.constant 0 : index
    %141 = vector.load %arg7[%c0_48, %c0_49] : memref<1x64xf32, #tpu.memory_space<vmem>>, vector<1x64xf32>
    %142 = vector.broadcast %141 : vector<1x64xf32> to vector<16x64xf32>
    %143 = arith.addf %140, %142 : vector<16x64xf32>
    %144 = arith.addf %143, %0 : vector<16x64xf32>
    %c0_50 = arith.constant 0 : index
    %c0_51 = arith.constant 0 : index
    %145 = vector.load %arg8[%c0_50, %c0_51] : memref<1x64xf32, #tpu.memory_space<vmem>>, vector<1x64xf32>
    %c0_52 = arith.constant 0 : index
    %c0_53 = arith.constant 0 : index
    %146 = vector.load %arg9[%c0_52, %c0_53] : memref<1x64xf32, #tpu.memory_space<vmem>>, vector<1x64xf32>
    %cst_54 = arith.constant dense<0.000000e+00> : vector<16xf32>
    %147 = vector.multi_reduction <add>, %144, %cst_54 [1] : vector<16x64xf32> to vector<16xf32>
    %148 = vector.shape_cast %147 : vector<16xf32> to vector<16x1xf32>
    %cst_55 = arith.constant 1.562500e-02 : f32
    %149 = vector.broadcast %cst_55 : f32 to vector<16x1xf32>
    %150 = arith.mulf %148, %149 : vector<16x1xf32>
    %151 = vector.broadcast %150 : vector<16x1xf32> to vector<16x64xf32>
    %152 = arith.subf %144, %151 : vector<16x64xf32>
    %153 = arith.mulf %152, %152 : vector<16x64xf32>
    %cst_56 = arith.constant dense<0.000000e+00> : vector<16xf32>
    %154 = vector.multi_reduction <add>, %153, %cst_56 [1] : vector<16x64xf32> to vector<16xf32>
    %155 = vector.shape_cast %154 : vector<16xf32> to vector<16x1xf32>
    %cst_57 = arith.constant 1.562500e-02 : f32
    %156 = vector.broadcast %cst_57 : f32 to vector<16x1xf32>
    %157 = arith.mulf %155, %156 : vector<16x1xf32>
    %cst_58 = arith.constant 9.99999974E-6 : f32
    %158 = vector.broadcast %cst_58 : f32 to vector<16x1xf32>
    %159 = arith.addf %157, %158 : vector<16x1xf32>
    %160 = math.rsqrt %159 : vector<16x1xf32>
    %161 = vector.broadcast %160 : vector<16x1xf32> to vector<16x64xf32>
    %162 = arith.mulf %152, %161 : vector<16x64xf32>
    %163 = vector.broadcast %145 : vector<1x64xf32> to vector<16x64xf32>
    %164 = arith.mulf %162, %163 : vector<16x64xf32>
    %165 = vector.broadcast %146 : vector<1x64xf32> to vector<16x64xf32>
    %166 = arith.addf %164, %165 : vector<16x64xf32>
    %c0_59 = arith.constant 0 : index
    %c0_60 = arith.constant 0 : index
    %167 = vector.load %arg10[%c0_59, %c0_60] : memref<64x256xf32, #tpu.memory_space<vmem>>, vector<64x256xf32>
    %cst_61 = arith.constant dense<0.000000e+00> : vector<16x256xf32>
    %168 = tpu.matmul %166, %167, %cst_61 {dimension_numbers = #tpu.dot_dimension_numbers<[1], [0], [0], [1], [0, 0, 1, 1], [], []>} : vector<16x64xf32>, vector<64x256xf32>, vector<16x256xf32> -> vector<16x256xf32>
    %c0_62 = arith.constant 0 : index
    %c0_63 = arith.constant 0 : index
    %169 = vector.load %arg11[%c0_62, %c0_63] : memref<1x256xf32, #tpu.memory_space<vmem>>, vector<1x256xf32>
    %170 = vector.broadcast %169 : vector<1x256xf32> to vector<16x256xf32>
    %171 = arith.addf %168, %170 : vector<16x256xf32>
    %cst_64 = arith.constant 5.000000e-01 : f32
    %172 = vector.broadcast %cst_64 : f32 to vector<16x256xf32>
    %173 = arith.mulf %172, %171 : vector<16x256xf32>
    %cst_65 = arith.constant 0.707106769 : f32
    %174 = vector.broadcast %cst_65 : f32 to vector<16x256xf32>
    %175 = arith.mulf %171, %174 : vector<16x256xf32>
    %176 = math.absf %175 : vector<16x256xf32>
    %cst_66 = arith.constant 0.327591091 : f32
    %177 = vector.broadcast %cst_66 : f32 to vector<16x256xf32>
    %178 = arith.mulf %177, %176 : vector<16x256xf32>
    %cst_67 = arith.constant 1.000000e+00 : f32
    %179 = vector.broadcast %cst_67 : f32 to vector<16x256xf32>
    %180 = arith.addf %179, %178 : vector<16x256xf32>
    %181 = tpu.reciprocal %180 {approx = true} : vector<16x256xf32> -> vector<16x256xf32>
    %182 = arith.mulf %180, %181 : vector<16x256xf32>
    %cst_68 = arith.constant 2.000000e+00 : f32
    %183 = vector.broadcast %cst_68 : f32 to vector<16x256xf32>
    %184 = arith.subf %183, %182 : vector<16x256xf32>
    %185 = arith.mulf %181, %184 : vector<16x256xf32>
    %cst_69 = arith.constant 1.06140542 : f32
    %186 = vector.broadcast %cst_69 : f32 to vector<16x256xf32>
    %187 = arith.mulf %186, %185 : vector<16x256xf32>
    %cst_70 = arith.constant -1.45315206 : f32
    %188 = vector.broadcast %cst_70 : f32 to vector<16x256xf32>
    %189 = arith.addf %187, %188 : vector<16x256xf32>
    %190 = arith.mulf %189, %185 : vector<16x256xf32>
    %cst_71 = arith.constant 1.42141378 : f32
    %191 = vector.broadcast %cst_71 : f32 to vector<16x256xf32>
    %192 = arith.addf %190, %191 : vector<16x256xf32>
    %193 = arith.mulf %192, %185 : vector<16x256xf32>
    %cst_72 = arith.constant -0.284496725 : f32
    %194 = vector.broadcast %cst_72 : f32 to vector<16x256xf32>
    %195 = arith.addf %193, %194 : vector<16x256xf32>
    %196 = arith.mulf %195, %185 : vector<16x256xf32>
    %cst_73 = arith.constant 0.254829586 : f32
    %197 = vector.broadcast %cst_73 : f32 to vector<16x256xf32>
    %198 = arith.addf %196, %197 : vector<16x256xf32>
    %199 = arith.mulf %198, %185 : vector<16x256xf32>
    %cst_74 = arith.constant 0.000000e+00 : f32
    %200 = vector.broadcast %cst_74 : f32 to vector<16x256xf32>
    %201 = arith.subf %200, %176 : vector<16x256xf32>
    %202 = arith.mulf %201, %176 : vector<16x256xf32>
    %203 = math.exp %202 : vector<16x256xf32>
    %204 = arith.mulf %199, %203 : vector<16x256xf32>
    %cst_75 = arith.constant 1.000000e+00 : f32
    %205 = vector.broadcast %cst_75 : f32 to vector<16x256xf32>
    %206 = arith.subf %205, %204 : vector<16x256xf32>
    %cst_76 = arith.constant 0.000000e+00 : f32
    %207 = vector.broadcast %cst_76 : f32 to vector<16x256xf32>
    %208 = arith.cmpf oge, %175, %207 : vector<16x256xf32>
    %cst_77 = arith.constant 0.000000e+00 : f32
    %209 = vector.broadcast %cst_77 : f32 to vector<16x256xf32>
    %210 = arith.subf %209, %206 : vector<16x256xf32>
    %211 = arith.select %208, %206, %210 : vector<16x256xi1>, vector<16x256xf32>
    %cst_78 = arith.constant 1.000000e+00 : f32
    %212 = vector.broadcast %cst_78 : f32 to vector<16x256xf32>
    %213 = arith.addf %212, %211 : vector<16x256xf32>
    %214 = arith.mulf %173, %213 : vector<16x256xf32>
    %c0_79 = arith.constant 0 : index
    %c0_80 = arith.constant 0 : index
    %215 = vector.load %arg12[%c0_79, %c0_80] : memref<256x64xf32, #tpu.memory_space<vmem>>, vector<256x64xf32>
    %cst_81 = arith.constant dense<0.000000e+00> : vector<16x64xf32>
    %216 = tpu.matmul %214, %215, %cst_81 {dimension_numbers = #tpu.dot_dimension_numbers<[1], [0], [0], [1], [0, 0, 1, 1], [], []>} : vector<16x256xf32>, vector<256x64xf32>, vector<16x64xf32> -> vector<16x64xf32>
    %c0_82 = arith.constant 0 : index
    %c0_83 = arith.constant 0 : index
    %217 = vector.load %arg13[%c0_82, %c0_83] : memref<1x64xf32, #tpu.memory_space<vmem>>, vector<1x64xf32>
    %218 = vector.broadcast %217 : vector<1x64xf32> to vector<16x64xf32>
    %219 = arith.addf %216, %218 : vector<16x64xf32>
    %220 = arith.addf %219, %144 : vector<16x64xf32>
    %c0_84 = arith.constant 0 : index
    %c0_85 = arith.constant 0 : index
    %221 = vector.load %arg14[%c0_84, %c0_85] : memref<16x64xf32, #tpu.memory_space<vmem>>, vector<16x64xf32>
    tpu.vector_store %arg14[%c0_84, %c0_85], %220 {strides = array<i32>} : memref<16x64xf32, #tpu.memory_space<vmem>>, vector<16x64xf32>,
    return
  }
  func.func @transform_0(%arg0: i32) -> (i32, i32) {
    %c0_i32 = arith.constant 0 : i32
    %c0_i32_0 = arith.constant 0 : i32
    return %arg0, %c0_i32 : i32, i32
  }
  func.func @transform_1(%arg0: i32) -> (i32, i32) {
    %c0_i32 = arith.constant 0 : i32
    %c0_i32_0 = arith.constant 0 : i32
    %c0_i32_1 = arith.constant 0 : i32
    return %c0_i32, %c0_i32_0 : i32, i32
  }
  func.func @transform_2(%arg0: i32) -> (i32, i32) {
    %c0_i32 = arith.constant 0 : i32
    %c0_i32_0 = arith.constant 0 : i32
    %c0_i32_1 = arith.constant 0 : i32
    return %c0_i32, %c0_i32_0 : i32, i32
  }
  func.func @transform_3(%arg0: i32) -> (i32, i32) {
    %c0_i32 = arith.constant 0 : i32
    %c0_i32_0 = arith.constant 0 : i32
    %c0_i32_1 = arith.constant 0 : i32
    return %c0_i32, %c0_i32_0 : i32, i32
  }
  func.func @transform_4(%arg0: i32) -> (i32, i32) {
    %c0_i32 = arith.constant 0 : i32
    %c0_i32_0 = arith.constant 0 : i32
    %c0_i32_1 = arith.constant 0 : i32
    return %c0_i32, %c0_i32_0 : i32, i32
  }
  func.func @transform_5(%arg0: i32) -> (i32, i32) {
    %c0_i32 = arith.constant 0 : i32
    %c0_i32_0 = arith.constant 0 : i32
    %c0_i32_1 = arith.constant 0 : i32
    return %c0_i32, %c0_i32_0 : i32, i32
  }
  func.func @transform_6(%arg0: i32) -> (i32, i32) {
    %c0_i32 = arith.constant 0 : i32
    %c0_i32_0 = arith.constant 0 : i32
    %c0_i32_1 = arith.constant 0 : i32
    return %c0_i32, %c0_i32_0 : i32, i32
  }
  func.func @transform_7(%arg0: i32) -> (i32, i32) {
    %c0_i32 = arith.constant 0 : i32
    %c0_i32_0 = arith.constant 0 : i32
    %c0_i32_1 = arith.constant 0 : i32
    return %c0_i32, %c0_i32_0 : i32, i32
  }
  func.func @transform_8(%arg0: i32) -> (i32, i32) {
    %c0_i32 = arith.constant 0 : i32
    %c0_i32_0 = arith.constant 0 : i32
    %c0_i32_1 = arith.constant 0 : i32
    return %c0_i32, %c0_i32_0 : i32, i32
  }
  func.func @transform_9(%arg0: i32) -> (i32, i32) {
    %c0_i32 = arith.constant 0 : i32
    %c0_i32_0 = arith.constant 0 : i32
    %c0_i32_1 = arith.constant 0 : i32
    return %c0_i32, %c0_i32_0 : i32, i32
  }
  func.func @transform_10(%arg0: i32) -> (i32, i32) {
    %c0_i32 = arith.constant 0 : i32
    %c0_i32_0 = arith.constant 0 : i32
    %c0_i32_1 = arith.constant 0 : i32
    return %c0_i32, %c0_i32_0 : i32, i32
  }
  func.func @transform_11(%arg0: i32) -> (i32, i32) {
    %c0_i32 = arith.constant 0 : i32
    %c0_i32_0 = arith.constant 0 : i32
    %c0_i32_1 = arith.constant 0 : i32
    return %c0_i32, %c0_i32_0 : i32, i32
  }
  func.func @transform_12(%arg0: i32) -> (i32, i32) {
    %c0_i32 = arith.constant 0 : i32
    %c0_i32_0 = arith.constant 0 : i32
    %c0_i32_1 = arith.constant 0 : i32
    return %c0_i32, %c0_i32_0 : i32, i32
  }
  func.func @transform_13(%arg0: i32) -> (i32, i32) {
    %c0_i32 = arith.constant 0 : i32
    %c0_i32_0 = arith.constant 0 : i32
    return %arg0, %c0_i32 : i32, i32
  }
}

</mosaic_0001>

<bundles_post_ra>
// kernel: encoder_block.1
= control target key start
LH: loop header
LB: loop body
LE: loop exit
PB: predicated region body
PF: predicated region fallthrough
CT: control target
= control target key end

     0   :  { %vm49_vm0 = vcmask 523264   ;;  %s3294_s0 = inlined_call_operand.vmem [shape: f32[16,64], index: 0, kind: input, shape index: {}]   ;;  %s3295_s1 = inlined_call_operand.vmem [shape: f32[1,64], index: 1, kind: input, shape index: {}]   ;;  %s3296_s2 = inlined_call_operand.vmem [shape: f32[1,64], index: 2, kind: input, shape index: {}]   ;;  %s3297_s3 = inlined_call_operand.vmem [shape: f32[64,192], index: 3, kind: input, shape index: {}]   ;;  %s3298_s4 = inlined_call_operand.vmem [shape: f32[1,192], index: 4, kind: input, shape index: {}]   ;;  %s3299_s5 = inlined_call_operand.vmem [shape: f32[64,64], index: 5, kind: input, shape index: {}]   ;;  %s3300_s6 = inlined_call_operand.vmem [shape: f32[1,64], index: 6, kind: input, shape index: {}]   ;;  %s3301_s7 = inlined_call_operand.vmem [shape: f32[1,64], index: 7, kind: input, shape index: {}]   ;;  %s3302_s8 = inlined_call_operand.vmem [shape: f32[1,64], index: 8, kind: input, shape index: {}]   ;;  %s3303_s9 = inlined_call_operand.vmem [shape: f32[64,256], index: 9, kind: input, shape index: {}]   ;;  %s3304_s10 = inlined_call_operand.vmem [shape: f32[1,256], index: 10, kind: input, shape index: {}]   ;;  %s3305_s11 = inlined_call_operand.vmem [shape: f32[256,64], index: 11, kind: input, shape index: {}]   ;;  %s3306_s12 = inlined_call_operand.vmem [shape: f32[1,64], index: 12, kind: input, shape index: {}]   ;;  %s3307_s13 = inlined_call_operand.hbm [shape: f32[16,64], index: 13, kind: output, shape index: {}]  }
   0x1   :  { %v2802_v0 = vld [vmem:[%s3294_s0] sm:$0xff]  ;;  %v2807_v1 = vld [vmem:[%s3294_s0 + $0x8] sm:$0xff] }
   0x2   :  { %18 = vsyncpa [#allocation3], 0  ;;  %v50_v2 = vsel %vm49_vm0, %v2802_v0, 0.0  ;;  %v53_v3 = vsel %vm49_vm0, %v2807_v1, 0.0  ;;  %v93_v14 = vld [vmem:[%s3297_s3 + $0x8] sm:$0xff]  ;;  %v95_v15 = vld [vmem:[%s3297_s3 + $0x18] sm:$0xff]  ;;  %v110_v55 = vlaneseq }
   0x3   :  { %51 = vadd.xlane.f32.xlu0 %v50_v2  ;;  %v2539_v16 = vpack.c.bf16 %v95_v15, %v93_v14  ;;  %v92_v17 = vld [vmem:[%s3297_s3] sm:$0xff]  ;;  %v94_v18 = vld [vmem:[%s3297_s3 + $0x10] sm:$0xff]  ;;  %v97_v20 = vld [vmem:[%s3297_s3 + $0x28] sm:$0xff]  ;;  %v2717_v33 = vmov 0.0   ;;  %vm2718_vm1 = vmmov 0   ;;  %s2719_s28 = smov 64  }
   0x4   :  { %v2541_v19 = vpack.c.bf16 %v94_v18, %v92_v17  ;;  %v99_v21 = vld [vmem:[%s3297_s3 + $0x38] sm:$0xff]  ;;  %v96_v23 = vld [vmem:[%s3297_s3 + $0x20] sm:$0xff]  ;;  %v98_v24 = vld [vmem:[%s3297_s3 + $0x30] sm:$0xff]  ;;  %190 = vmatprep.mubr.f32.mxu0 %v2717_v33  ;;  %2441 = vmatprep.subr.mxu1 %v2717_v33  ;;  %v2877_v56 = vshrl.u32 %v110_v55, 7  ;;  %s2721_s0 = smov 112   ;;  %vm206_vm2 = vcmask 130048  }
   0x5   :  { %2540 = vmatprep.subr.bf16.mxu0 %v2539_v16  ;;  %v2543_v22 = vpack.c.bf16 %v99_v21, %v97_v20  ;;  %v2545_v25 = vpack.c.bf16 %v98_v24, %v96_v23  ;;  %v101_v26 = vld [vmem:[%s3297_s3 + $0x48] sm:$0xff]  ;;  %v103_v27 = vld [vmem:[%s3297_s3 + $0x58] sm:$0xff]  ;;  %v100_v28 = vld [vmem:[%s3297_s3 + $0x40] sm:$0xff]  ;;  %2443 = vmatprep.mubr.msk.f32.mxu1 %vm2718_vm1, %v2717_v33  ;;  %vm360_vm3 = vcmask 64512   ;;  %s2722_s29 = smov 32   ;;  %s2723_s30 = smov 96  }
   0x6   :  { %2542 = vmatpush1.bf16.msra.mxu0 %v2541_v19  ;;  %v2547_v29 = vpack.c.bf16 %v103_v27, %v101_v26  ;;  %v102_v30 = vld [vmem:[%s3297_s3 + $0x50] sm:$0xff]  ;;  %v105_v31 = vld [vmem:[%s3297_s3 + $0x68] sm:$0xff]  ;;  %v107_v32 = vld [vmem:[%s3297_s3 + $0x78] sm:$0xff]  ;;  %v112_v57 = vsub.s32 0, %v2877_v56  ;;  %v116_v59 = vsub.s32 1, %v2877_v56  ;;  %s2724_s14 = smov 16  }
   0x7   :  { %54 = vadd.xlane.f32.xlu0 %v53_v3  ;;  %2544 = vmatprep.subr.bf16.mxu0 %v2543_v22  ;;  %v2549_v34 = vpack.c.bf16 %v102_v30, %v100_v28  ;;  %v2551_v35 = vpack.c.bf16 %v107_v32, %v105_v31  ;;  %v104_v36 = vld [vmem:[%s3297_s3 + $0x60] sm:$0xff]  ;;  %v106_v37 = vld [vmem:[%s3297_s3 + $0x70] sm:$0xff]  ;;  %s2725_s15 = smov 80  }
   0x8   :  { %v2553_v38 = vpack.c.bf16 %v106_v37, %v104_v36  ;;  %v2303_v46 = vld [vmem:[%s3295_s1] ss:$0 sm:$0xff] }
   0x9   :  { %v2304_v48 = vld [vmem:[%s3296_s2] ss:$0 sm:$0xff] }
   0xa   :  { %2546 = vmatpush1.bf16.msra.mxu0 %v2545_v25  ;;  %v108_v58 = vld [vmem:[%s3298_s4] sm:$0x3]  ;;  %s2720_s4 = smov 48  }
   0xb   :  { %2548 = vmatprep.subr.bf16.mxu0 %v2547_v29  ;;  %v113_v60 = vrot.slane %v108_v58, %v112_v57  ;;  %v117_v61 = vrot.slane %v108_v58, %v116_v59 }
   0xe   :  { %2550 = vmatpush1.bf16.msra.mxu0 %v2549_v34 }
   0xf   :  { %2552 = vmatprep.subr.bf16.mxu0 %v2551_v35 }
  0x12   :  { %2554 = vmatpush1.bf16.msra.mxu0 %v2553_v38 }
  0x13   :  { %2431 = vmatprep.subr.mxu0 %v2717_v33 }
  0x90   :  { %v52_v4 = vpop.xlane.xlu0 %51 }
  0x91   :  { %v56_v5 = vmul.f32 0.015625, %v52_v4 }
  0x93   :  { %v58_v6 = vsub.f32 %v2802_v0, %v56_v5 }
  0x94   :  { %v55_v7 = vpop.xlane.xlu0 %54 }
  0x95   :  { %v57_v8 = vmul.f32 0.015625, %v55_v7  ;;  %v60_v9 = vmul.f32 %v58_v6, %v58_v6 }
  0x97   :  { %v59_v10 = vsub.f32 %v2807_v1, %v57_v8  ;;  %v62_v11 = vsel %vm49_vm0, %v60_v9, 0.0 }
  0x98   :  { %63 = vadd.xlane.f32.xlu1 %v62_v11 }
  0x99   :  { %v61_v12 = vmul.f32 %v59_v10, %v59_v10 }
  0x9b   :  { %v65_v13 = vsel %vm49_vm0, %v61_v12, 0.0 }
  0x9c   :  { %66 = vadd.xlane.f32.xlu1 %v65_v13 }
 0x125   :  { %v64_v39 = vpop.xlane.xlu1 %63 }
 0x126   :  { %v68_v40 = vmul.f32 0.015625, %v64_v39 }
 0x128   :  { %v70_v41 = vadd.f32 1e-05, %v68_v40 }
 0x129   :  { %v67_v42 = vpop.xlane.xlu1 %66 }
 0x12a   :  { %2637 = vrsqrt.f32 %v70_v41  ;;  %v69_v43 = vmul.f32 0.015625, %v67_v42 }
 0x12c   :  { %v71_v44 = vadd.f32 1e-05, %v69_v43 }
 0x12e   :  { %2639 = vrsqrt.f32 %v71_v44 }
 0x134   :  { %v2638_v45 = vpop.eup %2637 }
 0x135   :  { %v74_v47 = vmul.f32 %v2638_v45, %v58_v6 }
 0x137   :  { %v82_v49 = vmul.f32 %v2303_v46, %v74_v47 }
 0x138   :  { %v2640_v50 = vpop.eup %2639 }
 0x139   :  { %v90_v51 = vadd.f32 %v2304_v48, %v82_v49  ;;  %v75_v52 = vmul.f32 %v2640_v50, %v59_v10 }
 0x13b   :  { %2305 = vmatmul.mubr.msk.f32.vlgmr.msra.gmra.mrb[0].mxu0 %vm49_vm0, %v90_v51  ;;  %v83_v53 = vmul.f32 %v2303_v46, %v75_v52 }
 0x13c   :  { %196 = vmatprep.mubr.f32.mxu0 %v2717_v33 }
 0x13d   :  { %v91_v54 = vadd.f32 %v2304_v48, %v83_v53 }
 0x13f   :  { %2306 = vmatmul.mubr.msk.f32.gmra.mrb[2].mxu0 %vm49_vm0, %v91_v54 }
 0x140   :  { %2433 = vmatprep.mubr.msk.f32.mxu0 %vm2718_vm1, %v2717_v33 }
 0x20e   :  { %v192_v62 = vpop.f32.mrb[0].mxu0 }
 0x20f   :  { %v2892_v63 = vadd.f32 %v192_v62, %v113_v60  ;;  %v194_v2 = vpop.f32.mrb[1].mxu0 }
 0x210   :  { %v2894_v3 = vadd.f32 %v194_v2, %v117_v61 }
 0x211   :  { %204 = vrot.lane.b32.xlu0 %v2892_v63, %s2719_s28 }
 0x212   :  { %v198_v4 = vpop.f32.mrb[2].mxu0  ;;  %2442 = vmatpush3.msra.mxu1 %v2894_v3 }
 0x213   :  { %v2898_v5 = vadd.f32 %v198_v4, %v113_v60  ;;  %v200_v6 = vpop.f32.mrb[3].mxu0  ;;  %2446 = vmatprep.subr.mxu1 %v2717_v33 }
 0x214   :  { %v2901_v7 = vadd.f32 %v200_v6, %v117_v61 }
 0x215   :  { %282 = vrot.lane.b32.xlu1 %v2898_v5, %s2719_s28  ;;  %s2726_s28 = smov [#allocation2]  }
 0x219   :  { %617 = vrot.lane.b32.xlu1 %v2898_v5, %s2720_s4 }
 0x21d   :  { %615 = vrot.lane.b32.xlu1 %v2898_v5, %s2721_s0 }
 0x283   :  { %v205_v8 = vpop.permute.xlu0 %204 }
 0x284   :  { %2432 = vmatpush3.xpose.msk.msra.mxu0 %vm206_vm2, %v205_v8 }
 0x285   :  { %2436 = vmatprep.subr.mxu0 %v2717_v33 }
 0x287   :  { %v283_v9 = vpop.permute.xlu1 %282  ;;  %2434 = vmatmul.mubr.msk.f32.vlgmr.msra.gmra.mrb[4].mxu0 %vm206_vm2, %v2892_v63 }
 0x288   :  { %2437 = vmatpush3.xpose.msk.msra.mxu0 %vm206_vm2, %v283_v9  ;;  %2438 = vmatprep.mubr.msk.f32.mxu0 %vm2718_vm1, %v2717_v33 }
 0x289   :  { %2456 = vmatprep.subr.mxu0 %v2717_v33 }
 0x28b   :  { %v618_v10 = vpop.permute.xlu1 %617  ;;  %2439 = vmatmul.mubr.msk.f32.vlgmr.msra.gmra.mrb[6].mxu0 %vm206_vm2, %v2898_v5 }
 0x28c   :  { %2457 = vmatpush3.xpose.msk.msra.mxu0 %vm206_vm2, %v618_v10  ;;  %2458 = vmatprep.mubr.msk.f32.mxu0 %vm2718_vm1, %v2717_v33 }
 0x28d   :  { %2466 = vmatprep.subr.mxu0 %v2717_v33 }
 0x28f   :  { %v616_v11 = vpop.permute.xlu1 %615 }
 0x290   :  { %2459 = vmatmul.mubr.msk.f32.vlgmr.msra.gmra.mrb[8].mxu0 %vm206_vm2, %v616_v11 }
 0x291   :  { %2468 = vmatprep.mubr.msk.f32.mxu0 %vm2718_vm1, %v2717_v33 }
 0x35a   :  { %v277_v12 = vpop.f32.mrb[4].mxu0 }
 0x35b   :  { %v358_v13 = vmul.f32 0.25, %v277_v12  ;;  %v2435_v14 = vpop.f32.mrb[5].mxu0 }
 0x35d   :  { %v361_v15 = vsel %vm360_vm3, %v358_v13, -inf }
 0x35e   :  { %362 = vmax.xlane.f32.xlu0 %v361_v15  ;;  %v354_v16 = vpop.f32.mrb[6].mxu0 }
 0x35f   :  { %v359_v17 = vmul.f32 0.25, %v354_v16  ;;  %v2440_v18 = vpop.f32.mrb[7].mxu0 }
 0x361   :  { %v364_v19 = vsel %vm360_vm3, %v359_v17, -inf }
 0x362   :  { %365 = vmax.xlane.f32.xlu1 %v364_v19 }
 0x363   :  { %v689_v20 = vpop.f32.mrb[8].mxu0 }
 0x364   :  { %v2460_v21 = vpop.f32.mrb[9].mxu0  ;;  %v694_v22 = vmul.f32 0.25, %v689_v20 }
 0x366   :  { %v698_v23 = vsel %vm360_vm3, %v694_v22, -inf }
 0x373   :  { %537 = vrot.lane.b32.xlu1 %v2892_v63, %s2721_s0 }
 0x397   :  { %699 = vmax.xlane.f32.xlu1 %v698_v23 }
 0x3a8   :  { %1043 = vrot.lane.b32.xlu1 %v2892_v63, %s2722_s29 }
 0x3ac   :  { %1041 = vrot.lane.b32.xlu1 %v2892_v63, %s2723_s30 }
 0x3b0   :  { %1121 = vrot.lane.b32.xlu1 %v2898_v5, %s2722_s29 }
 0x3eb   :  { %v363_v24 = vpop.xlane.xlu0 %362 }
 0x3ec   :  { %v367_v25 = vsub.f32 %v358_v13, %v363_v24 }
 0x3ee   :  { %v369_v26 = vmul.f32 1.442695, %v367_v25 }
 0x3ef   :  { %v366_v27 = vpop.xlane.xlu1 %365 }
 0x3f0   :  { %2641 = vpow2.f32 %v369_v26  ;;  %v368_v28 = vsub.f32 %v359_v17, %v366_v27 }
 0x3f2   :  { %v371_v29 = vmul.f32 1.442695, %v368_v28 }
 0x3f3   :  { %v538_v35 = vpop.permute.xlu1 %537 }
 0x3f4   :  { %2643 = vpow2.f32 %v371_v29 }
 0x3fa   :  { %v2642_v30 = vpop.eup %2641 }
 0x3fb   :  { %v373_v31 = vsel %vm360_vm3, %v2642_v30, 0.0 }
 0x3fc   :  { %374 = vadd.xlane.f32.xlu0 %v373_v31 }
 0x3fe   :  { %v2644_v32 = vpop.eup %2643 }
 0x3ff   :  { %v376_v34 = vsel %vm360_vm3, %v2644_v32, 0.0 }
 0x400   :  { %377 = vadd.xlane.f32.xlu0 %v376_v34 }
 0x416   :  { %539 = vrot.lane.b32.xlu0 %v2892_v63, %s2720_s4  ;;  %s2292_s4 = sshll.u32 %s2726_s28, 4  ;;  %s2293_s4 = int_to_ptr.vmem [resolvable:$true] %s2292_s4 }
 0x417   :  { %p2698_p1 = scmp.lt.s32.totalorder %s2293_s4, %s2293_s4 }
 0x424   :  { %v700_v36 = vpop.xlane.xlu1 %699 }
 0x425   :  { %v702_v37 = vsub.f32 %v694_v22, %v700_v36 }
 0x427   :  { %v705_v38 = vmul.f32 1.442695, %v702_v37 }
 0x428   :  { %v1044_v60 = vpop.permute.xlu1 %1043 }
 0x429   :  { %2645 = vpow2.f32 %v705_v38 }
 0x42c   :  { %v1042_v4 = vpop.permute.xlu1 %1041 }
 0x430   :  { %v1122_v8 = vpop.permute.xlu1 %1121 }
 0x433   :  { %v2646_v39 = vpop.eup %2645 }
 0x434   :  { %v710_v40 = vsel %vm360_vm3, %v2646_v39, 0.0 }
 0x435   :  { %711 = vadd.xlane.f32.xlu0 %v710_v40 }
 0x44b   :  { %801 = vrot.lane.b32.xlu0 %v2901_v7, %s2721_s0 }
 0x44f   :  { %1119 = vrot.lane.b32.xlu0 %v2898_v5, %s2723_s30 }
 0x489   :  { %v375_v41 = vpop.xlane.xlu0 %374 }
 0x48a   :  { %2647 = vrcp.f32 %v375_v41 }
 0x48d   :  { %v378_v42 = vpop.xlane.xlu0 %377 }
 0x48e   :  { %2649 = vrcp.f32 %v378_v42 }
 0x491   :  { %v540_v53 = vpop.permute.xlu0 %539 }
 0x494   :  { %v2648_v43 = vpop.eup %2647 }
 0x495   :  { %v381_v44 = vmul.f32 %v2648_v43, %v375_v41 }
 0x497   :  { %v383_v45 = vsub.f32 2.0, %v381_v44  ;;  %v878_v44 = vld [vmem:[%s3299_s5 + $0x18] sm:$0xff] }
 0x498   :  { %v2650_v46 = vpop.eup %2649 }
 0x499   :  { %v385_v47 = vmul.f32 %v2648_v43, %v383_v45  ;;  %v382_v48 = vmul.f32 %v2650_v46, %v378_v42 }
 0x49b   :  { %v387_v49 = vmul.f32 %v2642_v30, %v385_v47  ;;  %v384_v50 = vsub.f32 2.0, %v382_v48 }
 0x49d   :  { %v386_v51 = vmul.f32 %v2650_v46, %v384_v50  ;;  %2444 = vmatmul.mubr.msk.f32.vlgmr.msra.gmra.mrb[0].mxu1 %vm360_vm3, %v387_v49 }
 0x49e   :  { %2447 = vmatpush3.msra.mxu1 %v2901_v7  ;;  %2448 = vmatprep.mubr.msk.f32.mxu1 %vm2718_vm1, %v2717_v33 }
 0x49f   :  { %v388_v52 = vmul.f32 %v2644_v32, %v386_v51  ;;  %2451 = vmatprep.subr.mxu1 %v2717_v33 }
 0x4a1   :  { %2449 = vmatmul.mubr.msk.f32.vlgmr.msra.gmra.mrb[2].mxu1 %vm360_vm3, %v388_v52 }
 0x4a2   :  { %2453 = vmatprep.mubr.msk.f32.mxu1 %vm2718_vm1, %v2717_v33 }
 0x4a5   :  { %2452 = vmatpush3.xpose.msk.msra.mxu1 %vm206_vm2, %v540_v53 }
 0x4a6   :  { %2461 = vmatprep.subr.mxu1 %v2717_v33 }
 0x4a8   :  { %2454 = vmatmul.mubr.msk.f32.vlgmr.msra.gmra.mrb[4].mxu1 %vm206_vm2, %v538_v35 }
 0x4a9   :  { %2463 = vmatprep.mubr.msk.f32.mxu1 %vm2718_vm1, %v2717_v33 }
 0x4c2   :  { %v712_v54 = vpop.xlane.xlu0 %711 }
 0x4c3   :  { %2651 = vrcp.f32 %v712_v54 }
 0x4c6   :  { %v802_v55 = vpop.permute.xlu0 %801 }
 0x4c7   :  { %2467 = vmatpush3.msra.mxu0 %v802_v55 }
 0x4c8   :  { %2485 = vmatprep.subr.mxu0 %v2717_v33 }
 0x4ca   :  { %v1120_v9 = vpop.permute.xlu0 %1119 }
 0x4cd   :  { %v2652_v58 = vpop.eup %2651 }
 0x4ce   :  { %v716_v61 = vmul.f32 %v2652_v58, %v712_v54 }
 0x4d0   :  { %v718_v62 = vsub.f32 2.0, %v716_v61 }
 0x4d2   :  { %v720_v2 = vmul.f32 %v2652_v58, %v718_v62 }
 0x4d4   :  { %v722_v6 = vmul.f32 %v2646_v39, %v720_v2 }
 0x4d6   :  { %2469 = vmatmul.mubr.msk.f32.vlgmr.msra.gmra.mrb[10].mxu0 %vm360_vm3, %v722_v6 }
 0x4d7   :  { %2486 = vmatpush3.xpose.msk.msra.mxu0 %vm206_vm2, %v1044_v60  ;;  %2487 = vmatprep.mubr.msk.f32.mxu0 %vm2718_vm1, %v2717_v33 }
 0x4d8   :  { %2490 = vmatprep.subr.mxu0 %v2717_v33 }
 0x4da   :  { %2488 = vmatmul.mubr.msk.f32.vlgmr.msra.gmra.mrb[12].mxu0 %vm206_vm2, %v1042_v4 }
 0x4db   :  { %2491 = vmatpush3.xpose.msk.msra.mxu0 %vm206_vm2, %v1122_v8  ;;  %2492 = vmatprep.mubr.msk.f32.mxu0 %vm2718_vm1, %v2717_v33  ;;  %v535_v8 = vld [vmem:[%s3299_s5] sm:$0xff] }
 0x4dc   :  { %2500 = vmatprep.subr.mxu0 %v2717_v33 }
 0x4de   :  { %2493 = vmatmul.mubr.msk.f32.vlgmr.msra.gmra.mrb[14].mxu0 %vm206_vm2, %v1120_v9  ;;  %v536_v9 = vld [vmem:[%s3299_s5 + $0x8] sm:$0xff] }
 0x4df   :  { %2502 = vmatprep.mubr.msk.f32.mxu0 %vm2718_vm1, %v2717_v33 }
 0x570   :  { %v2970_v10 = vpop.f32.mrb[0].mxu1 }
 0x571   :  { %v2445_v11 = vpop.f32.mrb[1].mxu1 }
 0x572   :  { %v2559_v11 = vpack.c.bf16 %v536_v9, %v535_v8  ;;  %v2339_v8 = vld [vmem:[%s3300_s6] ss:$0 sm:$0xff] }
 0x574   :  { %v2972_v12 = vpop.f32.mrb[2].mxu1 }
 0x575   :  { %v2450_v13 = vpop.f32.mrb[3].mxu1 }
 0x57b   :  { %v611_v14 = vpop.f32.mrb[4].mxu1 }
 0x57c   :  { %v693_v15 = vmul.f32 0.25, %v611_v14  ;;  %v2455_v16 = vpop.f32.mrb[5].mxu1 }
 0x57e   :  { %v695_v17 = vsel %vm360_vm3, %v693_v15, -inf }
 0x57f   :  { %696 = vmax.xlane.f32.xlu1 %v695_v17 }
 0x5a9   :  { %v2975_v18 = vpop.f32.mrb[10].mxu0 }
 0x5aa   :  { %v2470_v19 = vpop.f32.mrb[11].mxu0 }
 0x5ad   :  { %v1115_v20 = vpop.f32.mrb[12].mxu0 }
 0x5ae   :  { %v1197_v21 = vmul.f32 0.25, %v1115_v20  ;;  %v2489_v22 = vpop.f32.mrb[13].mxu0 }
 0x5b0   :  { %v1199_v23 = vsel %vm360_vm3, %v1197_v21, -inf }
 0x5b1   :  { %1200 = vmax.xlane.f32.xlu1 %v1199_v23  ;;  %v1193_v24 = vpop.f32.mrb[14].mxu0 }
 0x5b2   :  { %v1198_v25 = vmul.f32 0.25, %v1193_v24  ;;  %v2494_v26 = vpop.f32.mrb[15].mxu0 }
 0x5b3   :  { %v1380_v26 = vld [vmem:[%s3299_s5 + $0x28] sm:$0xff] }
 0x5b4   :  { %v1202_v27 = vsel %vm360_vm3, %v1198_v25, -inf }
 0x5b5   :  { %1203 = vmax.xlane.f32.xlu1 %v1202_v27 }
 0x60c   :  { %v697_v28 = vpop.xlane.xlu1 %696 }
 0x60d   :  { %v701_v29 = vsub.f32 %v693_v15, %v697_v28 }
 0x60f   :  { %v703_v30 = vmul.f32 1.442695, %v701_v29 }
 0x611   :  { %2653 = vpow2.f32 %v703_v30 }
 0x61b   :  { %v2654_v31 = vpop.eup %2653 }
 0x61c   :  { %v707_v32 = vsel %vm360_vm3, %v2654_v31, 0.0 }
 0x61d   :  { %708 = vadd.xlane.f32.xlu0 %v707_v32 }
 0x633   :  { %724 = vrot.lane.b32.xlu0 %v2894_v3, %s2721_s0  ;;  %s2693_s0 = scalar_lea.vmem %s2293_s4, 256 }
 0x634   :  { %p2694_p0 = scmp.ne.s32.totalorder %s2293_s4, %s2693_s0  ;;  %p2699_p2 = scmp.lt.s32.totalorder %s2693_s0, %s2693_s0 }
 0x636   :  { %p2700_p3 = por %p2699_p2, %p2698_p1 }
 0x637   :  { %1303 = vrot.lane.b32.xlu0 %v2901_v7, %s2723_s30 }
 0x638   :  { %p2701_p4 = pnand %p2700_p3, %p2694_p0 }
 0x63b   :  { %1466 = vrot.lane.b32.xlu0 %v2892_v63, %s2724_s14 }
 0x63e   :  { %v1201_v34 = vpop.xlane.xlu1 %1200 }
 0x63f   :  { %1544 = vrot.lane.b32.xlu0 %v2898_v5, %s2724_s14  ;;  %v1205_v35 = vsub.f32 %v1197_v21, %v1201_v34 }
 0x641   :  { %v1207_v36 = vmul.f32 1.442695, %v1205_v35 }
 0x642   :  { %v1204_v37 = vpop.xlane.xlu1 %1203 }
 0x643   :  { %2655 = vpow2.f32 %v1207_v36  ;;  %1464 = vrot.lane.b32.xlu0 %v2892_v63, %s2725_s15  ;;  %v1206_v38 = vsub.f32 %v1198_v25, %v1204_v37  ;;  %v877_v63 = vld [vmem:[%s3299_s5 + $0x10] sm:$0xff] }
 0x644   :  { %v2555_v46 = vpack.c.bf16 %v878_v44, %v877_v63 }
 0x645   :  { %v1209_v39 = vmul.f32 1.442695, %v1206_v38 }
 0x647   :  { %2657 = vpow2.f32 %v1209_v39 }
 0x64d   :  { %v2988_v40 = vpop.eup %2655 }
 0x64e   :  { %v1211_v41 = vsel %vm360_vm3, %v2988_v40, 0.0 }
 0x64f   :  { %1212 = vadd.xlane.f32.xlu1 %v1211_v41 }
 0x651   :  { %v2658_v42 = vpop.eup %2657 }
 0x652   :  { %v1214_v43 = vsel %vm360_vm3, %v2658_v42, 0.0 }
 0x653   :  { %1215 = vadd.xlane.f32.xlu1 %v1214_v43 }
 0x664   :  { %1227 = vrot.lane.b32.xlu1 %v2894_v3, %s2723_s30 }
 0x668   :  { %1542 = vrot.lane.b32.xlu1 %v2898_v5, %s2725_s15 }
 0x6aa   :  { %v709_v45 = vpop.xlane.xlu0 %708 }
 0x6ab   :  { %2659 = vrcp.f32 %v709_v45 }
 0x6ae   :  { %v725_v47 = vpop.permute.xlu0 %724 }
 0x6af   :  { %2462 = vmatpush3.msra.mxu1 %v725_v47 }
 0x6b0   :  { %2556 = vmatprep.subr.bf16.mxu1 %v2555_v46 }
 0x6b2   :  { %v1304_v48 = vpop.permute.xlu0 %1303 }
 0x6b3   :  { %2501 = vmatpush3.msra.mxu0 %v1304_v48 }
 0x6b4   :  { %2512 = vmatprep.subr.mxu0 %v2717_v33 }
 0x6b5   :  { %v2660_v49 = vpop.eup %2659 }
 0x6b6   :  { %v715_v5 = vmul.f32 %v2660_v49, %v709_v45  ;;  %v1467_v58 = vpop.permute.xlu0 %1466 }
 0x6b8   :  { %v717_v50 = vsub.f32 2.0, %v715_v5 }
 0x6ba   :  { %v719_v51 = vmul.f32 %v2660_v49, %v717_v50  ;;  %v1545_v2 = vpop.permute.xlu0 %1544 }
 0x6bc   :  { %v721_v52 = vmul.f32 %v2654_v31, %v719_v51 }
 0x6be   :  { %2464 = vmatmul.mubr.msk.f32.vlgmr.msra.gmra.mrb[6].mxu1 %vm360_vm3, %v721_v52  ;;  %v1465_v6 = vpop.permute.xlu0 %1464 }
 0x6bf   :  { %2558 = vmatpush3.bf16.msra.mxu1 %v2555_v46 }
 0x6c0   :  { %2560 = vmatprep.subr.bf16.mxu1 %v2559_v11 }
 0x6dc   :  { %v1213_v53 = vpop.xlane.xlu1 %1212 }
 0x6e0   :  { %v1216_v54 = vpop.xlane.xlu1 %1215 }
 0x6e1   :  { %2661 = vrcp.f32 %v1216_v54 }
 0x6e2   :  { %2663 = vrcp.f32 %v1213_v53 }
 0x6e4   :  { %v1228_v20 = vpop.permute.xlu1 %1227 }
 0x6e8   :  { %v1543_v36 = vpop.permute.xlu1 %1542 }
 0x6eb   :  { %v2662_v55 = vpop.eup %2661 }
 0x6ec   :  { %v1220_v60 = vmul.f32 %v2662_v55, %v1216_v54  ;;  %v2664_v13 = vpop.eup %2663 }
 0x6ed   :  { %v1219_v14 = vmul.f32 %v2664_v13, %v1213_v53 }
 0x6ee   :  { %v1222_v61 = vsub.f32 2.0, %v1220_v60  ;;  %v1803_v60 = vld [vmem:[%s3299_s5 + $0x38] sm:$0xff] }
 0x6ef   :  { %v1221_v17 = vsub.f32 2.0, %v1219_v14 }
 0x6f0   :  { %v1224_v62 = vmul.f32 %v2662_v55, %v1222_v61 }
 0x6f1   :  { %v1223_v19 = vmul.f32 %v2664_v13, %v1221_v17 }
 0x6f2   :  { %v1226_v4 = vmul.f32 %v2658_v42, %v1224_v62 }
 0x6f3   :  { %v1225_v21 = vmul.f32 %v2988_v40, %v1223_v19 }
 0x6f4   :  { %2503 = vmatmul.mubr.msk.f32.vlgmr.msra.gmra.mrb[16].mxu0 %vm360_vm3, %v1226_v4 }
 0x6f5   :  { %2513 = vmatpush3.xpose.msk.msra.mxu0 %vm206_vm2, %v1467_v58  ;;  %2514 = vmatprep.mubr.msk.f32.mxu0 %vm2718_vm1, %v2717_v33  ;;  %v1802_v58 = vld [vmem:[%s3299_s5 + $0x30] sm:$0xff] }
 0x6f6   :  { %2522 = vmatprep.subr.mxu0 %v2717_v33  ;;  %v2567_v61 = vpack.c.bf16 %v1803_v60, %v1802_v58  ;;  %v2341_v60 = vld [vmem:[%s3302_s8] ss:$0 sm:$0xff] }
 0x6f8   :  { %2515 = vmatmul.mubr.msk.f32.vlgmr.msra.gmra.mrb[18].mxu0 %vm206_vm2, %v1465_v6 }
 0x6f9   :  { %2524 = vmatprep.mubr.msk.f32.mxu0 %vm2718_vm1, %v2717_v33 }
 0x791   :  { %v796_v15 = vpop.f32.mrb[6].mxu1 }
 0x792   :  { %v2465_v16 = vpop.f32.mrb[7].mxu1  ;;  %2475 = vmatprep.mubr.msk.f32.mxu1 %vm206_vm2, %v796_v15 }
 0x793   :  { %2476 = vmatmul.mubr.msk.f32.vlgmr.msra.gmra.mrb[8].mxu1 %vm206_vm2, %v2975_v18 }
 0x794   :  { %2482 = vmatprep.mubr.msk.f32.mxu1 %vm206_vm2, %v2970_v10  ;;  %2562 = vmatpush3.bf16.msra.mxu1 %v2559_v11 }
 0x795   :  { %2495 = vmatprep.subr.mxu1 %v2717_v33 }
 0x79b   :  { %2483 = vmatmul.mubr.msk.f32.vlgmr.msra.gmra.mrb[8].mxu1 %vm206_vm2, %v2972_v12  ;;  %v1379_v12 = vld [vmem:[%s3299_s5 + $0x20] sm:$0xff] }
 0x79c   :  { %2496 = vmatpush3.msra.mxu1 %v1228_v20  ;;  %2497 = vmatprep.mubr.msk.f32.mxu1 %vm2718_vm1, %v2717_v33  ;;  %v2563_v27 = vpack.c.bf16 %v1380_v26, %v1379_v12  ;;  %v1943_v12 = vld [vmem:[%s3303_s9 + $0x8] sm:$0xff]  ;;  %v1945_v26 = vld [vmem:[%s3303_s9 + $0x18] sm:$0xff] }
 0x79e   :  { %2564 = vmatprep.subr.bf16.mxu1 %v2563_v27 }
 0x79f   :  { %2498 = vmatmul.mubr.msk.f32.vlgmr.msra.gmra.mrb[10].mxu1 %vm360_vm3, %v1225_v21 }
 0x7a0   :  { %2566 = vmatpush3.bf16.msra.mxu1 %v2563_v27  ;;  %v2571_v27 = vpack.c.bf16 %v1945_v26, %v1943_v12  ;;  %v2192_v12 = vld [vmem:[%s3305_s11 + $0xb8] sm:$0xff] }
 0x7a1   :  { %2517 = vmatprep.subr.mxu1 %v2717_v33 }
 0x7c7   :  { %v1375_v18 = vpop.f32.mrb[16].mxu0 }
 0x7c8   :  { %v2504_v22 = vpop.f32.mrb[17].mxu0 }
 0x7cb   :  { %v1538_v10 = vpop.f32.mrb[18].mxu0 }
 0x7cc   :  { %v1620_v23 = vmul.f32 0.25, %v1538_v10  ;;  %v2516_v24 = vpop.f32.mrb[19].mxu0 }
 0x7ce   :  { %v1622_v25 = vsel %vm360_vm3, %v1620_v23, -inf }
 0x7cf   :  { %1623 = vmax.xlane.f32.xlu0 %v1622_v25 }
 0x85c   :  { %v1624_v28 = vpop.xlane.xlu0 %1623 }
 0x85d   :  { %v1628_v29 = vsub.f32 %v1620_v23, %v1624_v28  ;;  %v1942_v28 = vld [vmem:[%s3303_s9] sm:$0xff] }
 0x85f   :  { %v1630_v30 = vmul.f32 1.442695, %v1628_v29  ;;  %v1944_v29 = vld [vmem:[%s3303_s9 + $0x10] sm:$0xff] }
 0x861   :  { %2665 = vpow2.f32 %v1630_v30  ;;  %v2573_v30 = vpack.c.bf16 %v1944_v29, %v1942_v28  ;;  %v2176_v28 = vld [vmem:[%s3305_s11 + $0x38] sm:$0xff] }
 0x86b   :  { %v2666_v31 = vpop.eup %2665 }
 0x86c   :  { %v1634_v32 = vsel %vm360_vm3, %v2666_v31, 0.0 }
 0x86d   :  { %1635 = vadd.xlane.f32.xlu0 %v1634_v32  ;;  %v1949_v32 = vld [vmem:[%s3303_s9 + $0x38] sm:$0xff] }
 0x872   :  { %v1299_v34 = vpop.f32.mrb[10].mxu1 }
 0x873   :  { %v2499_v35 = vpop.f32.mrb[11].mxu1  ;;  %2509 = vmatprep.mubr.msk.f32.mxu1 %vm206_vm2, %v1299_v34 }
 0x874   :  { %2510 = vmatmul.mubr.msk.f32.vlgmr.msra.gmra.mrb[8].mxu1 %vm206_vm2, %v1375_v18  ;;  %v1946_v35 = vld [vmem:[%s3303_s9 + $0x20] sm:$0xff] }
 0x875   :  { %2518 = vmatpush3.xpose.msk.msra.mxu1 %vm206_vm2, %v1545_v2  ;;  %2519 = vmatprep.mubr.msk.f32.mxu1 %vm2718_vm1, %v2717_v33 }
 0x876   :  { %2527 = vmatprep.subr.mxu1 %v2717_v33 }
 0x878   :  { %2520 = vmatmul.mubr.msk.f32.vlgmr.msra.gmra.mrb[12].mxu1 %vm206_vm2, %v1543_v36  ;;  %v1948_v36 = vld [vmem:[%s3303_s9 + $0x30] sm:$0xff] }
 0x879   :  { %2529 = vmatprep.mubr.msk.f32.mxu1 %vm2718_vm1, %v2717_v33 }
 0x8fa   :  { %v1636_v46 = vpop.xlane.xlu0 %1635 }
 0x94b   :  { %v1616_v37 = vpop.f32.mrb[12].mxu1 }
 0x94c   :  { %v1621_v38 = vmul.f32 0.25, %v1616_v37  ;;  %v2521_v39 = vpop.f32.mrb[13].mxu1  ;;  %v2577_v37 = vpack.c.bf16 %v1948_v36, %v1946_v35  ;;  %v2178_v35 = vld [vmem:[%s3305_s11 + $0x48] sm:$0xff] }
 0x94d   :  { %v1953_v39 = vld [vmem:[%s3303_s9 + $0x58] sm:$0xff] }
 0x94e   :  { %v1625_v40 = vsel %vm360_vm3, %v1621_v38, -inf }
 0x94f   :  { %1626 = vmax.xlane.f32.xlu1 %v1625_v40 }
 0x960   :  { %1726 = vrot.lane.b32.xlu1 %v2901_v7, %s2725_s15 }
 0x9dc   :  { %v1627_v41 = vpop.xlane.xlu1 %1626 }
 0x9dd   :  { %v1629_v42 = vsub.f32 %v1621_v38, %v1627_v41  ;;  %v1951_v38 = vld [vmem:[%s3303_s9 + $0x48] sm:$0xff]  ;;  %v1950_v41 = vld [vmem:[%s3303_s9 + $0x40] sm:$0xff] }
 0x9de   :  { %v2579_v40 = vpack.c.bf16 %v1953_v39, %v1951_v38  ;;  %v2196_v38 = vld [vmem:[%s3305_s11 + $0xd8] sm:$0xff] }
 0x9df   :  { %v1632_v43 = vmul.f32 1.442695, %v1629_v42  ;;  %v1952_v42 = vld [vmem:[%s3303_s9 + $0x50] sm:$0xff] }
 0x9e0   :  { %v1727_v63 = vpop.permute.xlu1 %1726 }
 0x9e1   :  { %2667 = vpow2.f32 %v1632_v43  ;;  %2528 = vmatpush3.msra.mxu1 %v1727_v63  ;;  %v2581_v43 = vpack.c.bf16 %v1952_v42, %v1950_v41  ;;  %v1955_v63 = vld [vmem:[%s3303_s9 + $0x68] sm:$0xff]  ;;  %v2180_v41 = vld [vmem:[%s3305_s11 + $0x58] sm:$0xff] }
 0x9e2   :  { %2669 = vrcp.f32 %v1636_v46  ;;  %2568 = vmatprep.subr.bf16.mxu1 %v2567_v61 }
 0x9eb   :  { %v2668_v44 = vpop.eup %2667 }
 0x9ec   :  { %v1637_v45 = vsel %vm360_vm3, %v2668_v44, 0.0  ;;  %v2670_v47 = vpop.eup %2669 }
 0x9ed   :  { %1638 = vadd.xlane.f32.xlu0 %v1637_v45  ;;  %v1642_v48 = vmul.f32 %v2670_v47, %v1636_v46  ;;  %v1954_v46 = vld [vmem:[%s3303_s9 + $0x60] sm:$0xff] }
 0x9ef   :  { %v1644_v49 = vsub.f32 2.0, %v1642_v48 }
 0x9f1   :  { %v1646_v5 = vmul.f32 %v2670_v47, %v1644_v49  ;;  %v1956_v47 = vld [vmem:[%s3303_s9 + $0x70] sm:$0xff] }
 0x9f2   :  { %v2585_v48 = vpack.c.bf16 %v1956_v47, %v1954_v46  ;;  %v2182_v46 = vld [vmem:[%s3305_s11 + $0x68] sm:$0xff] }
 0x9f3   :  { %v1648_v50 = vmul.f32 %v2666_v31, %v1646_v5  ;;  %v1947_v31 = vld [vmem:[%s3303_s9 + $0x28] sm:$0xff] }
 0x9f4   :  { %v2575_v34 = vpack.c.bf16 %v1949_v32, %v1947_v31  ;;  %v2194_v31 = vld [vmem:[%s3305_s11 + $0xc8] sm:$0xff] }
 0xa03   :  { %1650 = vrot.lane.b32.xlu0 %v2894_v3, %s2725_s15 }
 0xa7a   :  { %v1639_v7 = vpop.xlane.xlu0 %1638 }
 0xa7b   :  { %2671 = vrcp.f32 %v1639_v7 }
 0xa7e   :  { %v1651_v51 = vpop.permute.xlu0 %1650 }
 0xa7f   :  { %2523 = vmatpush3.msra.mxu0 %v1651_v51 }
 0xa80   :  { %2525 = vmatmul.mubr.msk.f32.vlgmr.msra.gmra.mrb[20].mxu0 %vm360_vm3, %v1648_v50  ;;  %2572 = vmatprep.subr.bf16.mxu0 %v2571_v27  ;;  %v2175_v27 = vld [vmem:[%s3305_s11 + $0x30] sm:$0xff] }
 0xa81   :  { %2040 = vmatprep.mubr.f32.mxu0 %v2717_v33  ;;  %2574 = vmatpush1.bf16.msra.mxu0 %v2573_v30  ;;  %v2601_v29 = vpack.c.bf16 %v2176_v28, %v2175_v27  ;;  %v2193_v30 = vld [vmem:[%s3305_s11 + $0xc0] sm:$0xff] }
 0xa82   :  { %2576 = vmatprep.subr.bf16.mxu0 %v2575_v34  ;;  %v2603_v32 = vpack.c.bf16 %v2194_v31, %v2193_v30  ;;  %v2177_v34 = vld [vmem:[%s3305_s11 + $0x40] sm:$0xff] }
 0xa83   :  { %v2605_v36 = vpack.c.bf16 %v2178_v35, %v2177_v34 }
 0xa85   :  { %v2672_v52 = vpop.eup %2671  ;;  %2578 = vmatpush1.bf16.msra.mxu0 %v2577_v37  ;;  %v2195_v37 = vld [vmem:[%s3305_s11 + $0xd0] sm:$0xff] }
 0xa86   :  { %v1643_v53 = vmul.f32 %v2672_v52, %v1639_v7  ;;  %2580 = vmatprep.subr.bf16.mxu0 %v2579_v40  ;;  %v2607_v39 = vpack.c.bf16 %v2196_v38, %v2195_v37  ;;  %v2179_v40 = vld [vmem:[%s3305_s11 + $0x50] sm:$0xff] }
 0xa87   :  { %v2609_v42 = vpack.c.bf16 %v2180_v41, %v2179_v40 }
 0xa88   :  { %v1645_v54 = vsub.f32 2.0, %v1643_v53 }
 0xa89   :  { %2582 = vmatpush1.bf16.msra.mxu0 %v2581_v43  ;;  %v2197_v43 = vld [vmem:[%s3305_s11 + $0xe0] sm:$0xff] }
 0xa8a   :  { %v1647_v55 = vmul.f32 %v2672_v52, %v1645_v54 }
 0xa8c   :  { %v1649_v3 = vmul.f32 %v2668_v44, %v1647_v55  ;;  %v1957_v44 = vld [vmem:[%s3303_s9 + $0x78] sm:$0xff]  ;;  %v2340_v55 = vld [vmem:[%s3301_s7] ss:$0 sm:$0xff] }
 0xa8d   :  { %v2583_v45 = vpack.c.bf16 %v1957_v44, %v1955_v63  ;;  %v2198_v63 = vld [vmem:[%s3305_s11 + $0xe8] sm:$0xff] }
 0xa8e   :  { %2530 = vmatmul.mubr.msk.f32.vlgmr.msra.gmra.mrb[14].mxu1 %vm360_vm3, %v1649_v3  ;;  %v2611_v44 = vpack.c.bf16 %v2198_v63, %v2197_v43 }
 0xa8f   :  { %2570 = vmatpush3.bf16.msra.mxu1 %v2567_v61  ;;  %2584 = vmatprep.subr.bf16.mxu0 %v2583_v45  ;;  %v2181_v45 = vld [vmem:[%s3305_s11 + $0x60] sm:$0xff] }
 0xa90   :  { %2586 = vmatpush1.bf16.msra.mxu0 %v2585_v48  ;;  %v2613_v47 = vpack.c.bf16 %v2182_v46, %v2181_v45  ;;  %v2199_v48 = vld [vmem:[%s3305_s11 + $0xf0] sm:$0xff] }
 0xb53   :  { %v1722_v62 = vpop.f32.mrb[20].mxu0 }
 0xb54   :  { %v2526_v2 = vpop.f32.mrb[21].mxu0  ;;  %2536 = vmatprep.mubr.msk.f32.mxu1 %vm206_vm2, %v1722_v62 }
 0xb61   :  { %v1798_v4 = vpop.f32.mrb[14].mxu1 }
 0xb62   :  { %v2531_v6 = vpop.f32.mrb[15].mxu1  ;;  %2537 = vmatmul.mubr.msk.f32.vlgmr.msra.gmra.mrb[8].mxu1 %vm206_vm2, %v1798_v4 }
 0xb63   :  { %v2185_v6 = vld [vmem:[%s3305_s11 + $0x80] sm:$0xff] }
 0xc35   :  { %v2538_v9 = vpop.f32.mrb[8].mxu1 }
 0xc36   :  { %v1895_v11 = vadd.f32 %v2538_v9, %v2339_v8  ;;  %v1876_v13 = vpop.f32.mrb[9].mxu1 }
 0xc37   :  { %v1894_v14 = vadd.f32 %v2339_v8, %v1876_v13  ;;  %v2186_v8 = vld [vmem:[%s3305_s11 + $0x88] sm:$0xff] }
 0xc38   :  { %v3070_v15 = vadd.f32 %v1895_v11, %v2807_v1  ;;  %v2587_v9 = vpack.c.bf16 %v2186_v8, %v2185_v6  ;;  %v2169_v11 = vld [vmem:[%s3305_s11] sm:$0xff] }
 0xc39   :  { %v3073_v16 = vadd.f32 %v1894_v14, %v2802_v0  ;;  %v2187_v14 = vld [vmem:[%s3305_s11 + $0x90] sm:$0xff] }
 0xc3a   :  { %v1903_v17 = vsel %vm49_vm0, %v3070_v15, 0.0  ;;  %2588 = vmatprep.subr.bf16.mxu1 %v2587_v9 }
 0xc3b   :  { %1904 = vadd.xlane.f32.xlu0 %v1903_v17  ;;  %v1900_v19 = vsel %vm49_vm0, %v3073_v16, 0.0  ;;  %v2188_v17 = vld [vmem:[%s3305_s11 + $0x98] sm:$0xff] }
 0xc3c   :  { %1901 = vadd.xlane.f32.xlu1 %v1900_v19  ;;  %v2591_v19 = vpack.c.bf16 %v2188_v17, %v2187_v14 }
 0xcc8   :  { %v1905_v20 = vpop.xlane.xlu0 %1904 }
 0xcc9   :  { %v1907_v21 = vmul.f32 0.015625, %v1905_v20  ;;  %v1902_v18 = vpop.xlane.xlu1 %1901  ;;  %v2171_v20 = vld [vmem:[%s3305_s11 + $0x10] sm:$0xff] }
 0xcca   :  { %v1906_v22 = vmul.f32 0.015625, %v1902_v18 }
 0xccb   :  { %v1909_v10 = vsub.f32 %v3070_v15, %v1907_v21  ;;  %v2172_v21 = vld [vmem:[%s3305_s11 + $0x18] sm:$0xff] }
 0xccc   :  { %v1908_v1 = vsub.f32 %v3073_v16, %v1906_v22  ;;  %v2593_v18 = vpack.c.bf16 %v2172_v21, %v2171_v20  ;;  %v2189_v22 = vld [vmem:[%s3305_s11 + $0xa0] sm:$0xff] }
 0xccd   :  { %v1911_v23 = vmul.f32 %v1909_v10, %v1909_v10 }
 0xcce   :  { %v1910_v24 = vmul.f32 %v1908_v1, %v1908_v1 }
 0xccf   :  { %v1915_v0 = vsel %vm49_vm0, %v1911_v23, 0.0  ;;  %v2173_v23 = vld [vmem:[%s3305_s11 + $0x20] sm:$0xff] }
 0xcd0   :  { %1916 = vadd.xlane.f32.xlu1 %v1915_v0  ;;  %v1912_v25 = vsel %vm49_vm0, %v1910_v24, 0.0  ;;  %v2174_v24 = vld [vmem:[%s3305_s11 + $0x28] sm:$0xff] }
 0xcd1   :  { %1913 = vadd.xlane.f32.xlu0 %v1912_v25  ;;  %v2597_v0 = vpack.c.bf16 %v2174_v24, %v2173_v23  ;;  %v2191_v25 = vld [vmem:[%s3305_s11 + $0xb0] sm:$0xff] }
 0xcd2   :  { %v2599_v26 = vpack.c.bf16 %v2192_v12, %v2191_v25 }
 0xd5d   :  { %v1917_v49 = vpop.xlane.xlu1 %1916 }
 0xd5e   :  { %v1919_v5 = vmul.f32 0.015625, %v1917_v49  ;;  %v1914_v7 = vpop.xlane.xlu0 %1913  ;;  %v2200_v49 = vld [vmem:[%s3305_s11 + $0xf8] sm:$0xff] }
 0xd5f   :  { %v1918_v50 = vmul.f32 0.015625, %v1914_v7  ;;  %v2183_v7 = vld [vmem:[%s3305_s11 + $0x70] sm:$0xff] }
 0xd60   :  { %v1921_v51 = vadd.f32 1e-05, %v1919_v5  ;;  %v2615_v5 = vpack.c.bf16 %v2200_v49, %v2199_v48 }
 0xd61   :  { %v1920_v52 = vadd.f32 1e-05, %v1918_v50  ;;  %v2184_v50 = vld [vmem:[%s3305_s11 + $0x78] sm:$0xff] }
 0xd62   :  { %2673 = vrsqrt.f32 %v1921_v51  ;;  %v2617_v51 = vpack.c.bf16 %v2184_v50, %v2183_v7 }
 0xd63   :  { %2675 = vrsqrt.f32 %v1920_v52  ;;  %v1958_v52 = vld [vmem:[%s3304_s10] sm:$0x3] }
 0xd6c   :  { %v2674_v53 = vpop.eup %2673 }
 0xd6d   :  { %v2676_v54 = vpop.eup %2675  ;;  %v1925_v58 = vmul.f32 %v2674_v53, %v1909_v10  ;;  %v2190_v10 = vld [vmem:[%s3305_s11 + $0xa8] sm:$0xff]  ;;  %v1963_v53 = vrot.slane %v1958_v52, %v112_v57 }
 0xd6e   :  { %v1924_v3 = vmul.f32 %v2676_v54, %v1908_v1  ;;  %v2595_v1 = vpack.c.bf16 %v2190_v10, %v2189_v22  ;;  %v1967_v54 = vrot.slane %v1958_v52, %v116_v59 }
 0xd6f   :  { %v1933_v2 = vmul.f32 %v2340_v55, %v1925_v58 }
 0xd70   :  { %v1932_v61 = vmul.f32 %v2340_v55, %v1924_v3 }
 0xd71   :  { %v1941_v4 = vadd.f32 %v2341_v60, %v1933_v2 }
 0xd72   :  { %v1940_v62 = vadd.f32 %v2341_v60, %v1932_v61 }
 0xd74   :  { %2342 = vmatmul.mubr.msk.f32.vlgmr.msra.gmra.mrb[22].mxu0 %vm49_vm0, %v1940_v62 }
 0xd75   :  { %2046 = vmatprep.mubr.f32.mxu0 %v2717_v33  ;;  %v2170_v33 = vld [vmem:[%s3305_s11 + $0x8] sm:$0xff] }
 0xd76   :  { %v2589_v13 = vpack.c.bf16 %v2170_v33, %v2169_v11 }
 0xd78   :  { %2343 = vmatmul.mubr.msk.f32.gmra.mrb[24].mxu0 %vm49_vm0, %v1941_v4  ;;  %2590 = vmatpush3.bf16.msra.mxu1 %v2589_v13 }
 0xd79   :  { %2592 = vmatprep.subr.bf16.mxu1 %v2591_v19 }
 0xd7c   :  { %2594 = vmatpush3.bf16.msra.mxu1 %v2593_v18 }
 0xd7d   :  { %2596 = vmatprep.subr.bf16.mxu1 %v2595_v1 }
 0xd80   :  { %2598 = vmatpush3.bf16.msra.mxu1 %v2597_v0 }
 0xd81   :  { %2600 = vmatprep.subr.bf16.mxu1 %v2599_v26 }
 0xd84   :  { %2602 = vmatpush3.bf16.msra.mxu1 %v2601_v29 }
 0xd85   :  { %2604 = vmatprep.subr.bf16.mxu1 %v2603_v32 }
 0xd88   :  { %2606 = vmatpush3.bf16.msra.mxu1 %v2605_v36 }
 0xd89   :  { %2608 = vmatprep.subr.bf16.mxu1 %v2607_v39 }
 0xd8c   :  { %2610 = vmatpush3.bf16.msra.mxu1 %v2609_v42 }
 0xd8d   :  { %2612 = vmatprep.subr.bf16.mxu1 %v2611_v44 }
 0xd90   :  { %2614 = vmatpush3.bf16.msra.mxu1 %v2613_v47 }
 0xd91   :  { %2616 = vmatprep.subr.bf16.mxu1 %v2615_v5 }
 0xd94   :  { %2618 = vmatpush3.bf16.msra.mxu1 %v2617_v51 }
 0xe47   :  { %v2042_v55 = vpop.f32.mrb[22].mxu0 }
 0xe48   :  { %v3243_v3 = vadd.f32 %v2042_v55, %v1963_v53  ;;  %v2044_v58 = vpop.f32.mrb[23].mxu0 }
 0xe49   :  { %v3245_v60 = vadd.f32 %v2044_v58, %v1967_v54 }
 0xe4a   :  { %v3248_v61 = vmul.f32 0.70710677, %v3243_v3 }
 0xe4b   :  { %v3251_v62 = vmul.f32 0.70710677, %v3245_v60  ;;  %v2048_v2 = vpop.f32.mrb[24].mxu0 }
 0xe4c   :  { %v2061_v4 = vand.u32 2147483647, %v3248_v61  ;;  %v3254_v6 = vadd.f32 %v2048_v2, %v1963_v53  ;;  %v2050_v57 = vpop.f32.mrb[25].mxu0  ;;  %vm2149_vm4 = vcmp.ge.f32.partialorder %v3248_v61, 0.0 }
 0xe4d   :  { %v2062_v56 = vand.u32 2147483647, %v3251_v62  ;;  %v3257_v59 = vadd.f32 %v2050_v57, %v1967_v54  ;;  %vm2150_vm5 = vcmp.ge.f32.partialorder %v3251_v62, 0.0 }
 0xe4e   :  { %v2065_v8 = vmul.f32 0.3275911, %v2061_v4  ;;  %v3260_v9 = vmul.f32 0.70710677, %v3254_v6  ;;  %v2125_v24 = vsub.f32 0.0, %v2061_v4 }
 0xe4f   :  { %v2066_v11 = vmul.f32 0.3275911, %v2062_v56  ;;  %v3263_v33 = vmul.f32 0.70710677, %v3257_v59  ;;  %v2126_v12 = vsub.f32 0.0, %v2062_v56 }
 0xe50   :  { %v2069_v13 = vadd.f32 1.0, %v2065_v8  ;;  %v2063_v14 = vand.u32 2147483647, %v3260_v9  ;;  %v2129_v31 = vmul.f32 %v2125_v24, %v2061_v4  ;;  %vm2151_vm6 = vcmp.ge.f32.partialorder %v3260_v9, 0.0  ;;  %v2344_v9 = vld [vmem:[%s3306_s12] ss:$0 sm:$0xff] }
 0xe51   :  { %v2070_v17 = vadd.f32 1.0, %v2066_v11  ;;  %v2064_v19 = vand.u32 2147483647, %v3263_v33  ;;  %v2130_v37 = vmul.f32 %v2126_v12, %v2062_v56  ;;  %vm2152_vm7 = vcmp.ge.f32.partialorder %v3263_v33, 0.0 }
 0xe52   :  { %2677 = vrcp.f32 %v2069_v13  ;;  %v2067_v20 = vmul.f32 0.3275911, %v2063_v14  ;;  %v2127_v34 = vsub.f32 0.0, %v2063_v14  ;;  %v2133_v63 = vmul.f32 1.442695, %v2129_v31 }
 0xe53   :  { %2679 = vrcp.f32 %v2070_v17  ;;  %v2068_v21 = vmul.f32 0.3275911, %v2064_v19  ;;  %v2128_v39 = vsub.f32 0.0, %v2064_v19  ;;  %v2135_v48 = vmul.f32 1.442695, %v2130_v37 }
 0xe54   :  { %v2071_v18 = vadd.f32 1.0, %v2067_v20  ;;  %v2131_v44 = vmul.f32 %v2127_v34, %v2063_v14 }
 0xe55   :  { %v2072_v22 = vadd.f32 1.0, %v2068_v21  ;;  %v2132_v49 = vmul.f32 %v2128_v39, %v2064_v19 }
 0xe56   :  { %2681 = vrcp.f32 %v2071_v18  ;;  %v2137_v53 = vmul.f32 1.442695, %v2131_v44 }
 0xe57   :  { %2683 = vrcp.f32 %v2072_v22  ;;  %v2139_v2 = vmul.f32 1.442695, %v2132_v49 }
 0xe58   :  { %2685 = vpow2.f32 %v2133_v63 }
 0xe59   :  { %2687 = vpow2.f32 %v2135_v48  ;;  %v2054_v48 = vmul.f32 0.5, %v3245_v60  ;;  %v2055_v60 = vmul.f32 0.5, %v3254_v6 }
 0xe5a   :  { %2689 = vpow2.f32 %v2137_v53 }
 0xe5b   :  { %2691 = vpow2.f32 %v2139_v2 }
 0xe5c   :  { %v2678_v10 = vpop.eup %2677 }
 0xe5d   :  { %v2680_v1 = vpop.eup %2679  ;;  %v2077_v23 = vmul.f32 %v2678_v10, %v2069_v13 }
 0xe5e   :  { %v2078_v0 = vmul.f32 %v2680_v1, %v2070_v17 }
 0xe5f   :  { %v2081_v25 = vsub.f32 2.0, %v2077_v23 }
 0xe60   :  { %v2682_v26 = vpop.eup %2681  ;;  %v2082_v27 = vsub.f32 2.0, %v2078_v0 }
 0xe61   :  { %v2684_v28 = vpop.eup %2683  ;;  %v2085_v29 = vmul.f32 %v2678_v10, %v2081_v25  ;;  %v2079_v30 = vmul.f32 %v2682_v26, %v2071_v18 }
 0xe62   :  { %v2086_v32 = vmul.f32 %v2680_v1, %v2082_v27  ;;  %v2080_v35 = vmul.f32 %v2684_v28, %v2072_v22  ;;  %v2686_v0 = vpop.eup %2685 }
 0xe63   :  { %v2089_v36 = vmul.f32 1.0614054, %v2085_v29  ;;  %v2083_v38 = vsub.f32 2.0, %v2079_v30 }
 0xe64   :  { %v2084_v40 = vsub.f32 2.0, %v2080_v35  ;;  %v2090_v41 = vmul.f32 1.0614054, %v2086_v32 }
 0xe65   :  { %v2093_v42 = vadd.f32 -1.4531521, %v2089_v36  ;;  %v2087_v43 = vmul.f32 %v2682_v26, %v2083_v38  ;;  %v2688_v26 = vpop.eup %2687 }
 0xe66   :  { %v2088_v45 = vmul.f32 %v2684_v28, %v2084_v40  ;;  %v2094_v46 = vadd.f32 -1.4531521, %v2090_v41  ;;  %v2690_v36 = vpop.eup %2689 }
 0xe67   :  { %v2097_v47 = vmul.f32 %v2093_v42, %v2085_v29  ;;  %v2091_v5 = vmul.f32 1.0614054, %v2087_v43  ;;  %v2692_v39 = vpop.eup %2691 }
 0xe68   :  { %v2098_v7 = vmul.f32 %v2094_v46, %v2086_v32  ;;  %v2092_v50 = vmul.f32 1.0614054, %v2088_v45 }
 0xe69   :  { %v2101_v51 = vadd.f32 1.4214138, %v2097_v47  ;;  %v2095_v52 = vadd.f32 -1.4531521, %v2091_v5 }
 0xe6a   :  { %v2102_v54 = vadd.f32 1.4214138, %v2098_v7  ;;  %v2096_v55 = vadd.f32 -1.4531521, %v2092_v50 }
 0xe6b   :  { %v2105_v58 = vmul.f32 %v2101_v51, %v2085_v29  ;;  %v2099_v4 = vmul.f32 %v2095_v52, %v2087_v43  ;;  %v2056_v52 = vmul.f32 0.5, %v3257_v59 }
 0xe6c   :  { %v2106_v57 = vmul.f32 %v2102_v54, %v2086_v32  ;;  %v2100_v56 = vmul.f32 %v2096_v55, %v2088_v45 }
 0xe6d   :  { %v2109_v8 = vadd.f32 -0.28449672, %v2105_v58  ;;  %v2103_v11 = vadd.f32 1.4214138, %v2099_v4 }
 0xe6e   :  { %v2110_v13 = vadd.f32 -0.28449672, %v2106_v57  ;;  %v2104_v14 = vadd.f32 1.4214138, %v2100_v56 }
 0xe6f   :  { %v2113_v17 = vmul.f32 %v2109_v8, %v2085_v29  ;;  %v2107_v19 = vmul.f32 %v2103_v11, %v2087_v43 }
 0xe70   :  { %v2114_v20 = vmul.f32 %v2110_v13, %v2086_v32  ;;  %v2108_v21 = vmul.f32 %v2104_v14, %v2088_v45 }
 0xe71   :  { %v2117_v18 = vadd.f32 0.2548296, %v2113_v17  ;;  %v2111_v22 = vadd.f32 -0.28449672, %v2107_v19 }
 0xe72   :  { %v2118_v10 = vadd.f32 0.2548296, %v2114_v20  ;;  %v2112_v1 = vadd.f32 -0.28449672, %v2108_v21 }
 0xe73   :  { %v2121_v23 = vmul.f32 %v2117_v18, %v2085_v29  ;;  %v2115_v24 = vmul.f32 %v2111_v22, %v2087_v43 }
 0xe74   :  { %v2122_v25 = vmul.f32 %v2118_v10, %v2086_v32  ;;  %v2116_v12 = vmul.f32 %v2112_v1, %v2088_v45 }
 0xe75   :  { %v2141_v27 = vmul.f32 %v2686_v0, %v2121_v23  ;;  %v2119_v28 = vadd.f32 0.2548296, %v2115_v24 }
 0xe76   :  { %v2142_v30 = vmul.f32 %v2688_v26, %v2122_v25  ;;  %v2120_v31 = vadd.f32 0.2548296, %v2116_v12 }
 0xe77   :  { %v2145_v34 = vsub.f32 1.0, %v2141_v27  ;;  %v2123_v35 = vmul.f32 %v2119_v28, %v2087_v43 }
 0xe78   :  { %v2146_v37 = vsub.f32 1.0, %v2142_v30  ;;  %v2124_v38 = vmul.f32 %v2120_v31, %v2088_v45  ;;  %v2053_v45 = vmul.f32 0.5, %v3243_v3 }
 0xe79   :  { %v2153_v40 = vsub.f32 0.0, %v2145_v34  ;;  %v2143_v41 = vmul.f32 %v2690_v36, %v2123_v35 }
 0xe7a   :  { %v2154_v29 = vsub.f32 0.0, %v2146_v37  ;;  %v2144_v42 = vmul.f32 %v2692_v39, %v2124_v38 }
 0xe7b   :  { %v2157_v63 = vsel %vm2149_vm4, %v2145_v34, %v2153_v40  ;;  %v2147_v32 = vsub.f32 1.0, %v2143_v41 }
 0xe7c   :  { %v2161_v44 = vadd.f32 1.0, %v2157_v63  ;;  %v2158_v46 = vsel %vm2150_vm5, %v2146_v37, %v2154_v29  ;;  %v2148_v47 = vsub.f32 1.0, %v2144_v42 }
 0xe7d   :  { %v2162_v43 = vadd.f32 1.0, %v2158_v46  ;;  %v2155_v49 = vsub.f32 0.0, %v2147_v32 }
 0xe7e   :  { %v2156_v5 = vsub.f32 0.0, %v2148_v47  ;;  %v2165_v50 = vmul.f32 %v2161_v44, %v2053_v45 }
 0xe7f   :  { %v2166_v61 = vmul.f32 %v2162_v43, %v2054_v48  ;;  %v2159_v7 = vsel %vm2151_vm6, %v2147_v32, %v2155_v49 }
 0xe80   :  { %v2160_v51 = vsel %vm2152_vm7, %v2148_v47, %v2156_v5  ;;  %v2163_v62 = vadd.f32 1.0, %v2159_v7 }
 0xe81   :  { %2272 = vmatprep.mubr.f32.mxu1 %v2166_v61  ;;  %v2164_v53 = vadd.f32 1.0, %v2160_v51 }
 0xe82   :  { %2273 = vmatmul.mubr.f32.vlgmr.msra.gmra.mrb[16].mxu1 %v2165_v50  ;;  %v2167_v55 = vmul.f32 %v2163_v62, %v2055_v60 }
 0xe83   :  { %v2168_v54 = vmul.f32 %v2164_v53, %v2056_v52 }
 0xe85   :  { %2277 = vmatprep.mubr.f32.mxu1 %v2168_v54 }
 0xe86   :  { %2278 = vmatmul.mubr.f32.gmra.mrb[18].mxu1 %v2167_v55 }
 0xf55   :  { %v2425_v3 = vpop.f32.mrb[16].mxu1 }
 0xf56   :  { %v2426_v33 = vpop.f32.mrb[17].mxu1 }
 0xf57   :  { %v2427_v58 = vadd.f32 %v2426_v33, %v2425_v3 }
 0xf59   :  { %v2275_v2 = vadd.f32 %v2427_v58, %v2344_v9  ;;  %v2428_v4 = vpop.f32.mrb[18].mxu1 }
 0xf5a   :  { %v2429_v57 = vpop.f32.mrb[19].mxu1 }
 0xf5b   :  { %v2283_v59 = vadd.f32 %v2275_v2, %v3073_v16  ;;  %v2430_v56 = vadd.f32 %v2429_v57, %v2428_v4 }
 0xf5d   :  { %2285 = vst.msk [vmem:[#allocation2] sm:$0xff] %vm49_vm0, %v2283_v59  ;;  %v2280_v6 = vadd.f32 %v2430_v56, %v2344_v9 }
 0xf5f   :  { %v2284_v8 = vadd.f32 %v2280_v6, %v3070_v15 }
 0xf61   :  { %2286 = vst.msk [vmem:[#allocation2 + $0x8] sm:$0xff] %vm49_vm0, %v2284_v8 }
 0xf62   :  { %2704 = shalt.err (!%p2701_p4)
}
 0xf63   :  { %s2705_s6 = scalar_lea.hbm %s3307_s13, 256 }
 0xf64   :  { %p2706_p5 = scmp.ne.s32.totalorder %s3307_s13, %s2705_s6  ;;  %p2709_p6 = scmp.lt.u32.totalorder %s2705_s6, %s3307_s13 }
 0xf66   :  { %p2711_p7 = pnand %p2709_p6, %p2706_p5 }
 0xf68   :  { %2714 = shalt.err (!%p2711_p7)
}
 0xf69   :  { %s2727_s16 = smov 128   ;;  %s2728_s17 = smov 8  }
 0xf6a   :  { %2298 = dma.vmem_to_hbm [thread:$0]  %s2293_s4, 256, %s3307_s13, [#allocation3], %s2727_s16, %s2727_s16, %s2728_s17  }
 0xf6b   :  { %2715 = dma.done.wait [#allocation3], 256  }
 0xf6c   :  { %2716 = vsyncadd [#allocation3], 4294967040 }
 0xf6d   :  { %2302 = vsyncpa [#allocation3], 1 }

</bundles_post_ra>
